<compile_context>
chip_gen: v7x
topology: tpu7x:2x2x1
jax: 0.10.0
libtpu: 0.0.40
codegen_flags: <defaults>
</compile_context>

<pallas_src>
import math

import jax
import jax.numpy as jnp
from jax.experimental import pallas as pl
from jax.experimental.pallas import tpu as pltpu

# ----------------------------- small synthetic config -----------------------------
VOCAB = 64
HIDDEN = 32
NUM_HEADS = 4
HEAD_DIM = HIDDEN // NUM_HEADS
INTERMEDIATE = 64
NUM_LAYERS = 2
NUM_LABELS = 3
MAX_POS = 40
PAD_ID = 1          # RoBERTa / PhoBERT padding_idx
LN_EPS = 1e-5
TYPE_VOCAB = 1      # PhoBERT type_vocab_size = 1 (token_type_ids are all zero)


# ----------------------------------- kernel ---------------------------------------
def _layernorm(x, g, b):
    mu = jnp.mean(x, axis=-1, keepdims=True)
    var = jnp.mean(jnp.square(x - mu), axis=-1, keepdims=True)
    return (x - mu) * jax.lax.rsqrt(var + LN_EPS) * g + b


def _fused_layer_kernel(
        # per-batch inputs
        emb_ref, mask_ref, oh_ref,
        # shared / per-layer params
        emb_ln_g_ref, emb_ln_b_ref,
        w_qkv_ref, b_qkv_ref, w_o_ref, b_o_ref, ln1_g_ref, ln1_b_ref,
        w_i_ref, b_i_ref, w_f_ref, b_f_ref, ln2_g_ref, ln2_b_ref,
        cls_w1_ref, cls_b1_ref, cls_w2_ref, cls_b2_ref,
        # outputs
        logits_ref, nll_ref,
        # scratch
        h_ref, q_sc, k_sc, v_sc):
    layer = pl.program_id(1)
    scale = 1.0 / math.sqrt(HEAD_DIM)

    # Layer 0: embedding LayerNorm seeds the persistent hidden-state scratch.
    @pl.when(layer == 0)
    def _():
        h_ref[...] = _layernorm(emb_ref[0], emb_ln_g_ref[...], emb_ln_b_ref[...])

    x = h_ref[...]                                                    # (S, H) f32

    # ---------------- self-attention ----------------
    # Fused QKV projection: one (S, H) @ (H, 3H) bf16 MXU push, f32 accumulate.
    qkv = (jnp.dot(x.astype(jnp.bfloat16), w_qkv_ref[0],
                   preferred_element_type=jnp.float32) + b_qkv_ref[0])  # (S, 3H)

    # Re-lay heads onto the leading axis ONCE per layer (scratch scatter) so the
    # attention math below is head-batched (no per-head lane slicing / masked ops).
    for hh in range(NUM_HEADS):
        c0 = hh * HEAD_DIM
        q_sc[hh] = (qkv[:, c0:c0 + HEAD_DIM] * scale).astype(jnp.bfloat16)
        k_sc[hh] = qkv[:, HIDDEN + c0:HIDDEN + c0 + HEAD_DIM].astype(jnp.bfloat16)
        v_sc[hh] = qkv[:, 2 * HIDDEN + c0:2 * HIDDEN + c0 + HEAD_DIM].astype(
            jnp.bfloat16)

    qh = q_sc[...]                                                    # (NH, S, D) bf16
    kh = k_sc[...]
    vh = v_sc[...]

    s = jnp.einsum('hqd,hkd->hqk', qh, kh,
                   preferred_element_type=jnp.float32)                # (NH, S, S) f32
    s = s + mask_ref[0]                        # key-mask bias, broadcast hoisted
    m = jnp.max(s, axis=-1, keepdims=True)
    p = jnp.exp(s - m)
    p = p * pl.reciprocal(jnp.sum(p, axis=-1, keepdims=True), approx=True)
    ctx = jnp.einsum('hqk,hkd->hqd', p.astype(jnp.bfloat16), vh,
                     preferred_element_type=jnp.float32)              # (NH, S, D) f32

    # Output projection with the head merge folded in: attn = sum_h ctx[h] @ W_o[h].
    wo = w_o_ref[0]                                                   # (NH, D, H) bf16
    attn = jnp.zeros_like(x)
    for hh in range(NUM_HEADS):
        attn = attn + jnp.dot(ctx[hh].astype(jnp.bfloat16), wo[hh],
                              preferred_element_type=jnp.float32)
    attn = attn + b_o_ref[0]
    h1 = _layernorm(attn + x, ln1_g_ref[0], ln1_b_ref[0])

    # ---------------- feed-forward ----------------
    inter = (jnp.dot(h1.astype(jnp.bfloat16), w_i_ref[0],
                     preferred_element_type=jnp.float32) + b_i_ref[0])
    # TODO(synk): tanh-approx GELU (single EUP transcendental) instead of RoBERTa's
    # exact erf GELU - numerics-accepted change per perf review.
    inter = jax.nn.gelu(inter, approximate=True)
    ffn = (jnp.dot(inter.astype(jnp.bfloat16), w_f_ref[0],
                   preferred_element_type=jnp.float32) + b_f_ref[0])
    h2 = _layernorm(ffn + h1, ln2_g_ref[0], ln2_b_ref[0])
    h_ref[...] = h2

    # ---------------- classifier + per-sample loss on the last layer ----------------
    @pl.when(layer == NUM_LAYERS - 1)
    def _():
        x_cls = h2[0:1, :]                       # <s> token = row 0 (right padding)
        pooled = jnp.tanh(jnp.dot(x_cls.astype(jnp.bfloat16), cls_w1_ref[...],
                                  preferred_element_type=jnp.float32)
                          + cls_b1_ref[...])
        logits = (jnp.dot(pooled.astype(jnp.bfloat16), cls_w2_ref[...],
                          preferred_element_type=jnp.float32)
                  + cls_b2_ref[...])                                  # (1, L)
        logits_ref[0] = logits
        mm = jnp.max(logits, axis=-1, keepdims=True)
        lse = jnp.log(jnp.sum(jnp.exp(logits - mm), axis=-1, keepdims=True)) + mm
        nll_ref[0] = lse - jnp.sum(oh_ref[0] * logits, axis=-1, keepdims=True)


# -------------------------------- parameter init ----------------------------------
def init_params(key):
    # TODO(synk): original module loads pretrained phobert-base weights from disk;
    # here parameters are initialised deterministically (BERT-style N(0, 0.02)).
    # Matmul weights are stored bf16 (MXU operands); LN params / biases stay f32.
    def normal(k, shape, dtype=jnp.float32):
        return (0.02 * jax.random.normal(k, shape, jnp.float32)).astype(dtype)

    keys = iter(jax.random.split(key, 5 + NUM_LAYERS * 6))
    params = {
        "word_emb": normal(next(keys), (VOCAB, HIDDEN)),
        "pos_emb": normal(next(keys), (MAX_POS, HIDDEN)),
        "type_emb": normal(next(keys), (TYPE_VOCAB, HIDDEN)),
        "emb_ln_g": jnp.ones((1, HIDDEN), jnp.float32),
        "emb_ln_b": jnp.zeros((1, HIDDEN), jnp.float32),
        "cls_w1": normal(next(keys), (HIDDEN, HIDDEN), jnp.bfloat16),
        "cls_b1": jnp.zeros((1, HIDDEN), jnp.float32),
        "cls_w2": normal(next(keys), (HIDDEN, NUM_LABELS), jnp.bfloat16),
        "cls_b2": jnp.zeros((1, NUM_LABELS), jnp.float32),
    }
    w_qkv, w_o, w_i, w_f = [], [], [], []
    for _ in range(NUM_LAYERS):
        wq = normal(next(keys), (HIDDEN, HIDDEN))
        wk = normal(next(keys), (HIDDEN, HIDDEN))
        wv = normal(next(keys), (HIDDEN, HIDDEN))
        wo = normal(next(keys), (HIDDEN, HIDDEN))
        wi = normal(next(keys), (HIDDEN, INTERMEDIATE))
        wf = normal(next(keys), (INTERMEDIATE, HIDDEN))
        w_qkv.append(jnp.concatenate([wq, wk, wv], axis=1))          # (H, 3H)
        # W_o rows h*D:(h+1)*D act on head h's context -> pre-split per head so the
        # kernel folds the head merge into the output projection.
        w_o.append(wo.reshape(NUM_HEADS, HEAD_DIM, HIDDEN))
        w_i.append(wi)
        w_f.append(wf)
    params.update({
        "w_qkv": jnp.stack(w_qkv).astype(jnp.bfloat16),              # (L, H, 3H)
        "b_qkv": jnp.zeros((NUM_LAYERS, 1, 3 * HIDDEN), jnp.float32),
        "w_o": jnp.stack(w_o).astype(jnp.bfloat16),                  # (L, NH, D, H)
        "b_o": jnp.zeros((NUM_LAYERS, 1, HIDDEN), jnp.float32),
        "ln1_g": jnp.ones((NUM_LAYERS, 1, HIDDEN), jnp.float32),
        "ln1_b": jnp.zeros((NUM_LAYERS, 1, HIDDEN), jnp.float32),
        "w_i": jnp.stack(w_i).astype(jnp.bfloat16),                  # (L, H, I)
        "b_i": jnp.zeros((NUM_LAYERS, 1, INTERMEDIATE), jnp.float32),
        "w_f": jnp.stack(w_f).astype(jnp.bfloat16),                  # (L, I, H)
        "b_f": jnp.zeros((NUM_LAYERS, 1, HIDDEN), jnp.float32),
        "ln2_g": jnp.ones((NUM_LAYERS, 1, HIDDEN), jnp.float32),
        "ln2_b": jnp.zeros((NUM_LAYERS, 1, HIDDEN), jnp.float32),
    })
    return params


# ----------------------------------- forward --------------------------------------
def phobert_forward(params, input_ids, attention_mask, labels):
    B, S = input_ids.shape

    # RoBERTa position ids: cumsum over non-pad tokens, offset by padding_idx.
    not_pad = (input_ids != PAD_ID).astype(jnp.int32)
    position_ids = jnp.cumsum(not_pad, axis=1) * not_pad + PAD_ID
    token_type_ids = jnp.zeros((B, S), jnp.int32)

    # TODO(synk): embedding-table gathers stay in plain JAX (no clean BlockSpec form).
    emb = (params["word_emb"][input_ids]
           + params["pos_emb"][position_ids]
           + params["type_emb"][token_type_ids]).astype(jnp.float32)   # (B, S, H)

    mask_bias = ((1.0 - attention_mask.astype(jnp.float32)) * -10000.0
                 ).reshape(B, 1, S)
    onehot = jax.nn.one_hot(labels, NUM_LABELS,
                            dtype=jnp.float32).reshape(B, 1, NUM_LABELS)

    per_batch = lambda b, l: (b, 0, 0)       # per-batch activations / outputs
    per_layer3 = lambda b, l: (l, 0, 0)      # per-layer 3-D weights
    per_layer4 = lambda b, l: (l, 0, 0, 0)   # per-layer 4-D weights (w_o)
    shared2 = lambda b, l: (0, 0)            # shared 2-D params

    inputs = (emb, mask_bias, onehot,
              params["emb_ln_g"], params["emb_ln_b"],
              params["w_qkv"], params["b_qkv"], params["w_o"], params["b_o"],
              params["ln1_g"], params["ln1_b"],
              params["w_i"], params["b_i"], params["w_f"], params["b_f"],
              params["ln2_g"], params["ln2_b"],
              params["cls_w1"], params["cls_b1"],
              params["cls_w2"], params["cls_b2"])

    in_specs = [
        pl.BlockSpec((1, S, HIDDEN), per_batch),                       # emb
        pl.BlockSpec((1, 1, S), per_batch),                            # mask bias
        pl.BlockSpec((1, 1, NUM_LABELS), per_batch),                   # label one-hot
        pl.BlockSpec((1, HIDDEN), shared2),                            # emb_ln_g
        pl.BlockSpec((1, HIDDEN), shared2),                            # emb_ln_b
        pl.BlockSpec((1, HIDDEN, 3 * HIDDEN), per_layer3),             # w_qkv
        pl.BlockSpec((1, 1, 3 * HIDDEN), per_layer3),                  # b_qkv
        pl.BlockSpec((1, NUM_HEADS, HEAD_DIM, HIDDEN), per_layer4),    # w_o
        pl.BlockSpec((1, 1, HIDDEN), per_layer3),                      # b_o
        pl.BlockSpec((1, 1, HIDDEN), per_layer3),                      # ln1_g
        pl.BlockSpec((1, 1, HIDDEN), per_layer3),                      # ln1_b
        pl.BlockSpec((1, HIDDEN, INTERMEDIATE), per_layer3),           # w_i
        pl.BlockSpec((1, 1, INTERMEDIATE), per_layer3),                # b_i
        pl.BlockSpec((1, INTERMEDIATE, HIDDEN), per_layer3),           # w_f
        pl.BlockSpec((1, 1, HIDDEN), per_layer3),                      # b_f
        pl.BlockSpec((1, 1, HIDDEN), per_layer3),                      # ln2_g
        pl.BlockSpec((1, 1, HIDDEN), per_layer3),                      # ln2_b
        pl.BlockSpec((HIDDEN, HIDDEN), shared2),                       # cls_w1
        pl.BlockSpec((1, HIDDEN), shared2),                            # cls_b1
        pl.BlockSpec((HIDDEN, NUM_LABELS), shared2),                   # cls_w2
        pl.BlockSpec((1, NUM_LABELS), shared2),                        # cls_b2
    ]
    out_specs = (pl.BlockSpec((1, 1, NUM_LABELS), per_batch),          # logits
                 pl.BlockSpec((1, 1, 1), per_batch))                   # per-sample NLL

    logits3, nll3 = pl.pallas_call(
        _fused_layer_kernel,
        out_shape=(jax.ShapeDtypeStruct((B, 1, NUM_LABELS), jnp.float32),
                   jax.ShapeDtypeStruct((B, 1, 1), jnp.float32)),
        grid_spec=pltpu.PrefetchScalarGridSpec(
            num_scalar_prefetch=0,
            grid=(B, NUM_LAYERS),                  # batch parallel, layers pipelined
            in_specs=in_specs,
            out_specs=out_specs,
            scratch_shapes=[
                pltpu.VMEM((S, HIDDEN), jnp.float32),                  # hidden state
                pltpu.VMEM((NUM_HEADS, S, HEAD_DIM), jnp.bfloat16),    # q (head-major)
                pltpu.VMEM((NUM_HEADS, S, HEAD_DIM), jnp.bfloat16),    # k
                pltpu.VMEM((NUM_HEADS, S, HEAD_DIM), jnp.bfloat16),    # v
            ]),
        compiler_params=pltpu.CompilerParams(
            dimension_semantics=("parallel", "arbitrary"),
            # At real PhoBERT size, compute this from per-layer block + double
            # buffers; 32 MiB is safe headroom on all of v5e/v6e/v7x at this size.
            vmem_limit_bytes=32 * 1024 * 1024),
    )(*inputs)

    logits = logits3.reshape(B, NUM_LABELS)
    loss = jnp.mean(nll3)          # tiny post-kernel mean over batch
    return loss, logits


# ------------------------------------- main ----------------------------------------
if __name__ == "__main__":
    key = jax.random.PRNGKey(0)
    pkey, ikey, lkey = jax.random.split(key, 3)
    params = init_params(pkey)

    B, S = 2, 8
    input_ids = jax.random.randint(ikey, (B, S), 2, VOCAB, dtype=jnp.int32)
    input_ids = input_ids.at[1, 5:].set(PAD_ID)        # pad tail of second sequence
    attention_mask = (input_ids != PAD_ID).astype(jnp.int32)
    labels = jax.random.randint(lkey, (B,), 0, NUM_LABELS, dtype=jnp.int32)

    loss, logits = jax.jit(phobert_forward)(params, input_ids, attention_mask, labels)
    jax.block_until_ready((loss, logits))
    assert logits.shape == (B, NUM_LABELS) and loss.shape == ()
    print("KERNEL_OK")
</pallas_src>

<mosaic_0001>
module attributes {stable_mosaic.version = 11 : i64} {
  func.func @_fused_layer_kernel(%arg0: i32, %arg1: i32, %arg2: memref<1x8x32xf32, #tpu.memory_space<vmem>>, %arg3: memref<1x1x8xf32, #tpu.memory_space<vmem>>, %arg4: memref<1x1x3xf32, #tpu.memory_space<vmem>>, %arg5: memref<1x32xf32, #tpu.memory_space<vmem>>, %arg6: memref<1x32xf32, #tpu.memory_space<vmem>>, %arg7: memref<1x32x96xbf16, #tpu.memory_space<vmem>>, %arg8: memref<1x1x96xf32, #tpu.memory_space<vmem>>, %arg9: memref<1x4x8x32xbf16, #tpu.memory_space<vmem>>, %arg10: memref<1x1x32xf32, #tpu.memory_space<vmem>>, %arg11: memref<1x1x32xf32, #tpu.memory_space<vmem>>, %arg12: memref<1x1x32xf32, #tpu.memory_space<vmem>>, %arg13: memref<1x32x64xbf16, #tpu.memory_space<vmem>>, %arg14: memref<1x1x64xf32, #tpu.memory_space<vmem>>, %arg15: memref<1x64x32xbf16, #tpu.memory_space<vmem>>, %arg16: memref<1x1x32xf32, #tpu.memory_space<vmem>>, %arg17: memref<1x1x32xf32, #tpu.memory_space<vmem>>, %arg18: memref<1x1x32xf32, #tpu.memory_space<vmem>>, %arg19: memref<32x32xbf16, #tpu.memory_space<vmem>>, %arg20: memref<1x32xf32, #tpu.memory_space<vmem>>, %arg21: memref<32x3xbf16, #tpu.memory_space<vmem>>, %arg22: memref<1x3xf32, #tpu.memory_space<vmem>>, %arg23: memref<1x1x3xf32, #tpu.memory_space<vmem>>, %arg24: memref<1x1x1xf32, #tpu.memory_space<vmem>>, %arg25: memref<8x32xf32, #tpu.memory_space<vmem>>, %arg26: memref<4x8x8xbf16, #tpu.memory_space<vmem>>, %arg27: memref<4x8x8xbf16, #tpu.memory_space<vmem>>, %arg28: memref<4x8x8xbf16, #tpu.memory_space<vmem>>) attributes {dimension_semantics = [#tpu.dimension_semantics<parallel>, #tpu.dimension_semantics<arbitrary>], iteration_bounds = array<i64: 2, 2>, scalar_prefetch = 0 : i64, scratch_operands = 4 : i64, tpu.core_type = #tpu.core_type<tc>, window_params = [{transform_indices = @transform_0, window_bounds = array<i64: 1, 8, 32>}, {transform_indices = @transform_1, window_bounds = array<i64: 1, 1, 8>}, {transform_indices = @transform_2, window_bounds = array<i64: 1, 1, 3>}, {pipeline_mode = #tpu.pipeline_mode<synchronous>, transform_indices = @transform_3, window_bounds = array<i64: 1, 32>}, {pipeline_mode = #tpu.pipeline_mode<synchronous>, transform_indices = @transform_4, window_bounds = array<i64: 1, 32>}, {transform_indices = @transform_5, window_bounds = array<i64: 1, 32, 96>}, {transform_indices = @transform_6, window_bounds = array<i64: 1, 1, 96>}, {transform_indices = @transform_7, window_bounds = array<i64: 1, 4, 8, 32>}, {transform_indices = @transform_8, window_bounds = array<i64: 1, 1, 32>}, {transform_indices = @transform_9, window_bounds = array<i64: 1, 1, 32>}, {transform_indices = @transform_10, window_bounds = array<i64: 1, 1, 32>}, {transform_indices = @transform_11, window_bounds = array<i64: 1, 32, 64>}, {transform_indices = @transform_12, window_bounds = array<i64: 1, 1, 64>}, {transform_indices = @transform_13, window_bounds = array<i64: 1, 64, 32>}, {transform_indices = @transform_14, window_bounds = array<i64: 1, 1, 32>}, {transform_indices = @transform_15, window_bounds = array<i64: 1, 1, 32>}, {transform_indices = @transform_16, window_bounds = array<i64: 1, 1, 32>}, {pipeline_mode = #tpu.pipeline_mode<synchronous>, transform_indices = @transform_17, window_bounds = array<i64: 32, 32>}, {pipeline_mode = #tpu.pipeline_mode<synchronous>, transform_indices = @transform_18, window_bounds = array<i64: 1, 32>}, {pipeline_mode = #tpu.pipeline_mode<synchronous>, transform_indices = @transform_19, window_bounds = array<i64: 32, 3>}, {pipeline_mode = #tpu.pipeline_mode<synchronous>, transform_indices = @transform_20, window_bounds = array<i64: 1, 3>}, {transform_indices = @transform_21, window_bounds = array<i64: 1, 1, 3>}, {transform_indices = @transform_22, window_bounds = array<i64: 1, 1, 1>}]} {
    %c0_i32 = arith.constant 0 : i32
    %0 = arith.cmpi eq, %arg1, %c0_i32 : i32
    %1 = arith.extui %0 : i1 to i32
    %c0_i32_0 = arith.constant 0 : i32
    %2 = arith.cmpi ne, %1, %c0_i32_0 : i32
    scf.if %2 {
      %c0_116 = arith.constant 0 : index
      %c0_117 = arith.constant 0 : index
      %c0_118 = arith.constant 0 : index
      %223 = vector.load %arg2[%c0_116, %c0_117, %c0_118] : memref<1x8x32xf32, #tpu.memory_space<vmem>>, vector<1x8x32xf32>
      %224 = vector.shape_cast %223 : vector<1x8x32xf32> to vector<8x32xf32>
      %c0_119 = arith.constant 0 : index
      %c0_120 = arith.constant 0 : index
      %225 = vector.load %arg5[%c0_119, %c0_120] : memref<1x32xf32, #tpu.memory_space<vmem>>, vector<1x32xf32>
      %c0_121 = arith.constant 0 : index
      %c0_122 = arith.constant 0 : index
      %226 = vector.load %arg6[%c0_121, %c0_122] : memref<1x32xf32, #tpu.memory_space<vmem>>, vector<1x32xf32>
      %cst_123 = arith.constant dense<0.000000e+00> : vector<8xf32>
      %227 = vector.multi_reduction <add>, %224, %cst_123 [1] : vector<8x32xf32> to vector<8xf32>
      %228 = vector.shape_cast %227 : vector<8xf32> to vector<8x1xf32>
      %cst_124 = arith.constant 3.200000e+01 : f32
      %229 = vector.broadcast %cst_124 : f32 to vector<8x1xf32>
      %230 = arith.divf %228, %229 : vector<8x1xf32>
      %231 = vector.broadcast %230 : vector<8x1xf32> to vector<8x32xf32>
      %232 = arith.subf %224, %231 : vector<8x32xf32>
      %233 = arith.mulf %232, %232 : vector<8x32xf32>
      %cst_125 = arith.constant dense<0.000000e+00> : vector<8xf32>
      %234 = vector.multi_reduction <add>, %233, %cst_125 [1] : vector<8x32xf32> to vector<8xf32>
      %235 = vector.shape_cast %234 : vector<8xf32> to vector<8x1xf32>
      %cst_126 = arith.constant 3.200000e+01 : f32
      %236 = vector.broadcast %cst_126 : f32 to vector<8x1xf32>
      %237 = arith.divf %235, %236 : vector<8x1xf32>
      %238 = vector.broadcast %230 : vector<8x1xf32> to vector<8x32xf32>
      %239 = arith.subf %224, %238 : vector<8x32xf32>
      %cst_127 = arith.constant 9.99999974E-6 : f32
      %240 = vector.broadcast %cst_127 : f32 to vector<8x1xf32>
      %241 = arith.addf %237, %240 : vector<8x1xf32>
      %242 = math.rsqrt %241 : vector<8x1xf32>
      %243 = vector.broadcast %242 : vector<8x1xf32> to vector<8x32xf32>
      %244 = arith.mulf %239, %243 : vector<8x32xf32>
      %245 = vector.broadcast %225 : vector<1x32xf32> to vector<8x32xf32>
      %246 = arith.mulf %244, %245 : vector<8x32xf32>
      %247 = vector.broadcast %226 : vector<1x32xf32> to vector<8x32xf32>
      %248 = arith.addf %246, %247 : vector<8x32xf32>
      %c0_128 = arith.constant 0 : index
      %c0_129 = arith.constant 0 : index
      %249 = vector.load %arg25[%c0_128, %c0_129] : memref<8x32xf32, #tpu.memory_space<vmem>>, vector<8x32xf32>
      tpu.vector_store %arg25[%c0_128, %c0_129], %248 {strides = array<i32>} : memref<8x32xf32, #tpu.memory_space<vmem>>, vector<8x32xf32>,
    } else {
    }
    %c0 = arith.constant 0 : index
    %c0_1 = arith.constant 0 : index
    %3 = vector.load %arg25[%c0, %c0_1] : memref<8x32xf32, #tpu.memory_space<vmem>>, vector<8x32xf32>
    %4 = arith.truncf %3 : vector<8x32xf32> to vector<8x32xbf16>
    %c0_2 = arith.constant 0 : index
    %c0_3 = arith.constant 0 : index
    %c0_4 = arith.constant 0 : index
    %5 = vector.load %arg7[%c0_2, %c0_3, %c0_4] : memref<1x32x96xbf16, #tpu.memory_space<vmem>>, vector<1x32x96xbf16>
    %6 = vector.shape_cast %5 : vector<1x32x96xbf16> to vector<32x96xbf16>
    %cst = arith.constant dense<0.000000e+00> : vector<8x96xf32>
    %7 = tpu.matmul %4, %6, %cst {dimension_numbers = #tpu.dot_dimension_numbers<[1], [0], [0], [1], [0, 0, 1, 1], [], []>} : vector<8x32xbf16>, vector<32x96xbf16>, vector<8x96xf32> -> vector<8x96xf32>
    %c0_5 = arith.constant 0 : index
    %c0_6 = arith.constant 0 : index
    %c0_7 = arith.constant 0 : index
    %8 = vector.load %arg8[%c0_5, %c0_6, %c0_7] : memref<1x1x96xf32, #tpu.memory_space<vmem>>, vector<1x1x96xf32>
    %9 = vector.shape_cast %8 : vector<1x1x96xf32> to vector<1x96xf32>
    %10 = vector.broadcast %9 : vector<1x96xf32> to vector<8x96xf32>
    %11 = arith.addf %7, %10 : vector<8x96xf32>
    %12 = vector.extract_strided_slice %11 {offsets = [0, 0], sizes = [8, 8], strides = [1, 1]} : vector<8x96xf32> to vector<8x8xf32>
    %cst_8 = arith.constant 0.353553385 : f32
    %13 = vector.broadcast %cst_8 : f32 to vector<8x8xf32>
    %14 = arith.mulf %12, %13 : vector<8x8xf32>
    %15 = arith.truncf %14 : vector<8x8xf32> to vector<8x8xbf16>
    %c0_9 = arith.constant 0 : index
    %c0_10 = arith.constant 0 : index
    %c0_11 = arith.constant 0 : index
    %16 = vector.load %arg26[%c0_9, %c0_10, %c0_11] : memref<4x8x8xbf16, #tpu.memory_space<vmem>>, vector<1x8x8xbf16>
    %17 = vector.shape_cast %16 : vector<1x8x8xbf16> to vector<8x8xbf16>
    %18 = vector.shape_cast %15 : vector<8x8xbf16> to vector<1x8x8xbf16>
    tpu.vector_store %arg26[%c0_9, %c0_10, %c0_11], %18 {strides = array<i32>} : memref<4x8x8xbf16, #tpu.memory_space<vmem>>, vector<1x8x8xbf16>,
    %19 = vector.extract_strided_slice %11 {offsets = [0, 32], sizes = [8, 8], strides = [1, 1]} : vector<8x96xf32> to vector<8x8xf32>
    %20 = arith.truncf %19 : vector<8x8xf32> to vector<8x8xbf16>
    %c0_12 = arith.constant 0 : index
    %c0_13 = arith.constant 0 : index
    %c0_14 = arith.constant 0 : index
    %21 = vector.load %arg27[%c0_12, %c0_13, %c0_14] : memref<4x8x8xbf16, #tpu.memory_space<vmem>>, vector<1x8x8xbf16>
    %22 = vector.shape_cast %21 : vector<1x8x8xbf16> to vector<8x8xbf16>
    %23 = vector.shape_cast %20 : vector<8x8xbf16> to vector<1x8x8xbf16>
    tpu.vector_store %arg27[%c0_12, %c0_13, %c0_14], %23 {strides = array<i32>} : memref<4x8x8xbf16, #tpu.memory_space<vmem>>, vector<1x8x8xbf16>,
    %24 = vector.extract_strided_slice %11 {offsets = [0, 64], sizes = [8, 8], strides = [1, 1]} : vector<8x96xf32> to vector<8x8xf32>
    %25 = arith.truncf %24 : vector<8x8xf32> to vector<8x8xbf16>
    %c0_15 = arith.constant 0 : index
    %c0_16 = arith.constant 0 : index
    %c0_17 = arith.constant 0 : index
    %26 = vector.load %arg28[%c0_15, %c0_16, %c0_17] : memref<4x8x8xbf16, #tpu.memory_space<vmem>>, vector<1x8x8xbf16>
    %27 = vector.shape_cast %26 : vector<1x8x8xbf16> to vector<8x8xbf16>
    %28 = vector.shape_cast %25 : vector<8x8xbf16> to vector<1x8x8xbf16>
    tpu.vector_store %arg28[%c0_15, %c0_16, %c0_17], %28 {strides = array<i32>} : memref<4x8x8xbf16, #tpu.memory_space<vmem>>, vector<1x8x8xbf16>,
    %29 = vector.extract_strided_slice %11 {offsets = [0, 8], sizes = [8, 8], strides = [1, 1]} : vector<8x96xf32> to vector<8x8xf32>
    %cst_18 = arith.constant 0.353553385 : f32
    %30 = vector.broadcast %cst_18 : f32 to vector<8x8xf32>
    %31 = arith.mulf %29, %30 : vector<8x8xf32>
    %32 = arith.truncf %31 : vector<8x8xf32> to vector<8x8xbf16>
    %c1 = arith.constant 1 : index
    %c0_19 = arith.constant 0 : index
    %c0_20 = arith.constant 0 : index
    %33 = vector.load %arg26[%c1, %c0_19, %c0_20] : memref<4x8x8xbf16, #tpu.memory_space<vmem>>, vector<1x8x8xbf16>
    %34 = vector.shape_cast %33 : vector<1x8x8xbf16> to vector<8x8xbf16>
    %35 = vector.shape_cast %32 : vector<8x8xbf16> to vector<1x8x8xbf16>
    tpu.vector_store %arg26[%c1, %c0_19, %c0_20], %35 {strides = array<i32>} : memref<4x8x8xbf16, #tpu.memory_space<vmem>>, vector<1x8x8xbf16>,
    %36 = vector.extract_strided_slice %11 {offsets = [0, 40], sizes = [8, 8], strides = [1, 1]} : vector<8x96xf32> to vector<8x8xf32>
    %37 = arith.truncf %36 : vector<8x8xf32> to vector<8x8xbf16>
    %c1_21 = arith.constant 1 : index
    %c0_22 = arith.constant 0 : index
    %c0_23 = arith.constant 0 : index
    %38 = vector.load %arg27[%c1_21, %c0_22, %c0_23] : memref<4x8x8xbf16, #tpu.memory_space<vmem>>, vector<1x8x8xbf16>
    %39 = vector.shape_cast %38 : vector<1x8x8xbf16> to vector<8x8xbf16>
    %40 = vector.shape_cast %37 : vector<8x8xbf16> to vector<1x8x8xbf16>
    tpu.vector_store %arg27[%c1_21, %c0_22, %c0_23], %40 {strides = array<i32>} : memref<4x8x8xbf16, #tpu.memory_space<vmem>>, vector<1x8x8xbf16>,
    %41 = vector.extract_strided_slice %11 {offsets = [0, 72], sizes = [8, 8], strides = [1, 1]} : vector<8x96xf32> to vector<8x8xf32>
    %42 = arith.truncf %41 : vector<8x8xf32> to vector<8x8xbf16>
    %c1_24 = arith.constant 1 : index
    %c0_25 = arith.constant 0 : index
    %c0_26 = arith.constant 0 : index
    %43 = vector.load %arg28[%c1_24, %c0_25, %c0_26] : memref<4x8x8xbf16, #tpu.memory_space<vmem>>, vector<1x8x8xbf16>
    %44 = vector.shape_cast %43 : vector<1x8x8xbf16> to vector<8x8xbf16>
    %45 = vector.shape_cast %42 : vector<8x8xbf16> to vector<1x8x8xbf16>
    tpu.vector_store %arg28[%c1_24, %c0_25, %c0_26], %45 {strides = array<i32>} : memref<4x8x8xbf16, #tpu.memory_space<vmem>>, vector<1x8x8xbf16>,
    %46 = vector.extract_strided_slice %11 {offsets = [0, 16], sizes = [8, 8], strides = [1, 1]} : vector<8x96xf32> to vector<8x8xf32>
    %cst_27 = arith.constant 0.353553385 : f32
    %47 = vector.broadcast %cst_27 : f32 to vector<8x8xf32>
    %48 = arith.mulf %46, %47 : vector<8x8xf32>
    %49 = arith.truncf %48 : vector<8x8xf32> to vector<8x8xbf16>
    %c2 = arith.constant 2 : index
    %c0_28 = arith.constant 0 : index
    %c0_29 = arith.constant 0 : index
    %50 = vector.load %arg26[%c2, %c0_28, %c0_29] : memref<4x8x8xbf16, #tpu.memory_space<vmem>>, vector<1x8x8xbf16>
    %51 = vector.shape_cast %50 : vector<1x8x8xbf16> to vector<8x8xbf16>
    %52 = vector.shape_cast %49 : vector<8x8xbf16> to vector<1x8x8xbf16>
    tpu.vector_store %arg26[%c2, %c0_28, %c0_29], %52 {strides = array<i32>} : memref<4x8x8xbf16, #tpu.memory_space<vmem>>, vector<1x8x8xbf16>,
    %53 = vector.extract_strided_slice %11 {offsets = [0, 48], sizes = [8, 8], strides = [1, 1]} : vector<8x96xf32> to vector<8x8xf32>
    %54 = arith.truncf %53 : vector<8x8xf32> to vector<8x8xbf16>
    %c2_30 = arith.constant 2 : index
    %c0_31 = arith.constant 0 : index
    %c0_32 = arith.constant 0 : index
    %55 = vector.load %arg27[%c2_30, %c0_31, %c0_32] : memref<4x8x8xbf16, #tpu.memory_space<vmem>>, vector<1x8x8xbf16>
    %56 = vector.shape_cast %55 : vector<1x8x8xbf16> to vector<8x8xbf16>
    %57 = vector.shape_cast %54 : vector<8x8xbf16> to vector<1x8x8xbf16>
    tpu.vector_store %arg27[%c2_30, %c0_31, %c0_32], %57 {strides = array<i32>} : memref<4x8x8xbf16, #tpu.memory_space<vmem>>, vector<1x8x8xbf16>,
    %58 = vector.extract_strided_slice %11 {offsets = [0, 80], sizes = [8, 8], strides = [1, 1]} : vector<8x96xf32> to vector<8x8xf32>
    %59 = arith.truncf %58 : vector<8x8xf32> to vector<8x8xbf16>
    %c2_33 = arith.constant 2 : index
    %c0_34 = arith.constant 0 : index
    %c0_35 = arith.constant 0 : index
    %60 = vector.load %arg28[%c2_33, %c0_34, %c0_35] : memref<4x8x8xbf16, #tpu.memory_space<vmem>>, vector<1x8x8xbf16>
    %61 = vector.shape_cast %60 : vector<1x8x8xbf16> to vector<8x8xbf16>
    %62 = vector.shape_cast %59 : vector<8x8xbf16> to vector<1x8x8xbf16>
    tpu.vector_store %arg28[%c2_33, %c0_34, %c0_35], %62 {strides = array<i32>} : memref<4x8x8xbf16, #tpu.memory_space<vmem>>, vector<1x8x8xbf16>,
    %63 = vector.extract_strided_slice %11 {offsets = [0, 24], sizes = [8, 8], strides = [1, 1]} : vector<8x96xf32> to vector<8x8xf32>
    %cst_36 = arith.constant 0.353553385 : f32
    %64 = vector.broadcast %cst_36 : f32 to vector<8x8xf32>
    %65 = arith.mulf %63, %64 : vector<8x8xf32>
    %66 = arith.truncf %65 : vector<8x8xf32> to vector<8x8xbf16>
    %c3 = arith.constant 3 : index
    %c0_37 = arith.constant 0 : index
    %c0_38 = arith.constant 0 : index
    %67 = vector.load %arg26[%c3, %c0_37, %c0_38] : memref<4x8x8xbf16, #tpu.memory_space<vmem>>, vector<1x8x8xbf16>
    %68 = vector.shape_cast %67 : vector<1x8x8xbf16> to vector<8x8xbf16>
    %69 = vector.shape_cast %66 : vector<8x8xbf16> to vector<1x8x8xbf16>
    tpu.vector_store %arg26[%c3, %c0_37, %c0_38], %69 {strides = array<i32>} : memref<4x8x8xbf16, #tpu.memory_space<vmem>>, vector<1x8x8xbf16>,
    %70 = vector.extract_strided_slice %11 {offsets = [0, 56], sizes = [8, 8], strides = [1, 1]} : vector<8x96xf32> to vector<8x8xf32>
    %71 = arith.truncf %70 : vector<8x8xf32> to vector<8x8xbf16>
    %c3_39 = arith.constant 3 : index
    %c0_40 = arith.constant 0 : index
    %c0_41 = arith.constant 0 : index
    %72 = vector.load %arg27[%c3_39, %c0_40, %c0_41] : memref<4x8x8xbf16, #tpu.memory_space<vmem>>, vector<1x8x8xbf16>
    %73 = vector.shape_cast %72 : vector<1x8x8xbf16> to vector<8x8xbf16>
    %74 = vector.shape_cast %71 : vector<8x8xbf16> to vector<1x8x8xbf16>
    tpu.vector_store %arg27[%c3_39, %c0_40, %c0_41], %74 {strides = array<i32>} : memref<4x8x8xbf16, #tpu.memory_space<vmem>>, vector<1x8x8xbf16>,
    %75 = vector.extract_strided_slice %11 {offsets = [0, 88], sizes = [8, 8], strides = [1, 1]} : vector<8x96xf32> to vector<8x8xf32>
    %76 = arith.truncf %75 : vector<8x8xf32> to vector<8x8xbf16>
    %c3_42 = arith.constant 3 : index
    %c0_43 = arith.constant 0 : index
    %c0_44 = arith.constant 0 : index
    %77 = vector.load %arg28[%c3_42, %c0_43, %c0_44] : memref<4x8x8xbf16, #tpu.memory_space<vmem>>, vector<1x8x8xbf16>
    %78 = vector.shape_cast %77 : vector<1x8x8xbf16> to vector<8x8xbf16>
    %79 = vector.shape_cast %76 : vector<8x8xbf16> to vector<1x8x8xbf16>
    tpu.vector_store %arg28[%c3_42, %c0_43, %c0_44], %79 {strides = array<i32>} : memref<4x8x8xbf16, #tpu.memory_space<vmem>>, vector<1x8x8xbf16>,
    %c0_45 = arith.constant 0 : index
    %c0_46 = arith.constant 0 : index
    %c0_47 = arith.constant 0 : index
    %80 = vector.load %arg26[%c0_45, %c0_46, %c0_47] : memref<4x8x8xbf16, #tpu.memory_space<vmem>>, vector<4x8x8xbf16>
    %c0_48 = arith.constant 0 : index
    %c0_49 = arith.constant 0 : index
    %c0_50 = arith.constant 0 : index
    %81 = vector.load %arg27[%c0_48, %c0_49, %c0_50] : memref<4x8x8xbf16, #tpu.memory_space<vmem>>, vector<4x8x8xbf16>
    %c0_51 = arith.constant 0 : index
    %c0_52 = arith.constant 0 : index
    %c0_53 = arith.constant 0 : index
    %82 = vector.load %arg28[%c0_51, %c0_52, %c0_53] : memref<4x8x8xbf16, #tpu.memory_space<vmem>>, vector<4x8x8xbf16>
    "tpu.trace_start"() <{level = 10 : i32, message = "hqd,hkd->hqk"}> : () -> ()
    %cst_54 = arith.constant dense<0.000000e+00> : vector<4x8x8xf32>
    %83 = tpu.matmul %80, %81, %cst_54 {dimension_numbers = #tpu.dot_dimension_numbers<[2], [2], [1], [1], [0, 0, 0, 1, 1, 1], [0], [0]>} : vector<4x8x8xbf16>, vector<4x8x8xbf16>, vector<4x8x8xf32> -> vector<4x8x8xf32>
    "tpu.trace_stop"() : () -> ()
    %c0_55 = arith.constant 0 : index
    %c0_56 = arith.constant 0 : index
    %c0_57 = arith.constant 0 : index
    %84 = vector.load %arg3[%c0_55, %c0_56, %c0_57] : memref<1x1x8xf32, #tpu.memory_space<vmem>>, vector<1x1x8xf32>
    %85 = vector.shape_cast %84 : vector<1x1x8xf32> to vector<1x8xf32>
    %86 = vector.shape_cast %85 : vector<1x8xf32> to vector<1x1x8xf32>
    %87 = vector.broadcast %86 : vector<1x1x8xf32> to vector<4x8x8xf32>
    %88 = arith.addf %83, %87 : vector<4x8x8xf32>
    %cst_58 = arith.constant dense<0xFF800000> : vector<4x8xf32>
    %89 = vector.multi_reduction <maximumf>, %88, %cst_58 [2] : vector<4x8x8xf32> to vector<4x8xf32>
    %90 = vector.shape_cast %89 : vector<4x8xf32> to vector<4x8x1xf32>
    %91 = vector.broadcast %90 : vector<4x8x1xf32> to vector<4x8x8xf32>
    %92 = arith.subf %88, %91 : vector<4x8x8xf32>
    %93 = math.exp %92 : vector<4x8x8xf32>
    %cst_59 = arith.constant dense<0.000000e+00> : vector<4x8xf32>
    %94 = vector.multi_reduction <add>, %93, %cst_59 [2] : vector<4x8x8xf32> to vector<4x8xf32>
    %95 = vector.shape_cast %94 : vector<4x8xf32> to vector<4x8x1xf32>
    %96 = tpu.reciprocal %95 {approx = true} : vector<4x8x1xf32> -> vector<4x8x1xf32>
    %97 = vector.broadcast %96 : vector<4x8x1xf32> to vector<4x8x8xf32>
    %98 = arith.mulf %93, %97 : vector<4x8x8xf32>
    %99 = arith.truncf %98 : vector<4x8x8xf32> to vector<4x8x8xbf16>
    "tpu.trace_start"() <{level = 10 : i32, message = "hqk,hkd->hqd"}> : () -> ()
    %cst_60 = arith.constant dense<0.000000e+00> : vector<4x8x8xf32>
    %100 = tpu.matmul %99, %82, %cst_60 {dimension_numbers = #tpu.dot_dimension_numbers<[2], [1], [1], [2], [0, 0, 0, 1, 1, 2], [0], [0]>} : vector<4x8x8xbf16>, vector<4x8x8xbf16>, vector<4x8x8xf32> -> vector<4x8x8xf32>
    "tpu.trace_stop"() : () -> ()
    %c0_61 = arith.constant 0 : index
    %c0_62 = arith.constant 0 : index
    %c0_63 = arith.constant 0 : index
    %c0_64 = arith.constant 0 : index
    %101 = vector.load %arg9[%c0_61, %c0_62, %c0_63, %c0_64] : memref<1x4x8x32xbf16, #tpu.memory_space<vmem>>, vector<1x4x8x32xbf16>
    %102 = vector.shape_cast %101 : vector<1x4x8x32xbf16> to vector<4x8x32xbf16>
    %cst_65 = arith.constant 0.000000e+00 : f32
    %103 = vector.broadcast %cst_65 : f32 to vector<8x32xf32>
    %104 = vector.extract_strided_slice %100 {offsets = [0, 0, 0], sizes = [1, 8, 8], strides = [1, 1, 1]} : vector<4x8x8xf32> to vector<1x8x8xf32>
    %105 = vector.shape_cast %104 : vector<1x8x8xf32> to vector<8x8xf32>
    %106 = arith.truncf %105 : vector<8x8xf32> to vector<8x8xbf16>
    %107 = vector.extract_strided_slice %102 {offsets = [0, 0, 0], sizes = [1, 8, 32], strides = [1, 1, 1]} : vector<4x8x32xbf16> to vector<1x8x32xbf16>
    %108 = vector.shape_cast %107 : vector<1x8x32xbf16> to vector<8x32xbf16>
    %cst_66 = arith.constant dense<0.000000e+00> : vector<8x32xf32>
    %109 = tpu.matmul %106, %108, %cst_66 {dimension_numbers = #tpu.dot_dimension_numbers<[1], [0], [0], [1], [0, 0, 1, 1], [], []>} : vector<8x8xbf16>, vector<8x32xbf16>, vector<8x32xf32> -> vector<8x32xf32>
    %110 = arith.addf %103, %109 : vector<8x32xf32>
    %111 = vector.extract_strided_slice %100 {offsets = [1, 0, 0], sizes = [1, 8, 8], strides = [1, 1, 1]} : vector<4x8x8xf32> to vector<1x8x8xf32>
    %112 = vector.shape_cast %111 : vector<1x8x8xf32> to vector<8x8xf32>
    %113 = arith.truncf %112 : vector<8x8xf32> to vector<8x8xbf16>
    %114 = vector.extract_strided_slice %102 {offsets = [1, 0, 0], sizes = [1, 8, 32], strides = [1, 1, 1]} : vector<4x8x32xbf16> to vector<1x8x32xbf16>
    %115 = vector.shape_cast %114 : vector<1x8x32xbf16> to vector<8x32xbf16>
    %cst_67 = arith.constant dense<0.000000e+00> : vector<8x32xf32>
    %116 = tpu.matmul %113, %115, %cst_67 {dimension_numbers = #tpu.dot_dimension_numbers<[1], [0], [0], [1], [0, 0, 1, 1], [], []>} : vector<8x8xbf16>, vector<8x32xbf16>, vector<8x32xf32> -> vector<8x32xf32>
    %117 = arith.addf %110, %116 : vector<8x32xf32>
    %118 = vector.extract_strided_slice %100 {offsets = [2, 0, 0], sizes = [1, 8, 8], strides = [1, 1, 1]} : vector<4x8x8xf32> to vector<1x8x8xf32>
    %119 = vector.shape_cast %118 : vector<1x8x8xf32> to vector<8x8xf32>
    %120 = arith.truncf %119 : vector<8x8xf32> to vector<8x8xbf16>
    %121 = vector.extract_strided_slice %102 {offsets = [2, 0, 0], sizes = [1, 8, 32], strides = [1, 1, 1]} : vector<4x8x32xbf16> to vector<1x8x32xbf16>
    %122 = vector.shape_cast %121 : vector<1x8x32xbf16> to vector<8x32xbf16>
    %cst_68 = arith.constant dense<0.000000e+00> : vector<8x32xf32>
    %123 = tpu.matmul %120, %122, %cst_68 {dimension_numbers = #tpu.dot_dimension_numbers<[1], [0], [0], [1], [0, 0, 1, 1], [], []>} : vector<8x8xbf16>, vector<8x32xbf16>, vector<8x32xf32> -> vector<8x32xf32>
    %124 = arith.addf %117, %123 : vector<8x32xf32>
    %125 = vector.extract_strided_slice %100 {offsets = [3, 0, 0], sizes = [1, 8, 8], strides = [1, 1, 1]} : vector<4x8x8xf32> to vector<1x8x8xf32>
    %126 = vector.shape_cast %125 : vector<1x8x8xf32> to vector<8x8xf32>
    %127 = arith.truncf %126 : vector<8x8xf32> to vector<8x8xbf16>
    %128 = vector.extract_strided_slice %102 {offsets = [3, 0, 0], sizes = [1, 8, 32], strides = [1, 1, 1]} : vector<4x8x32xbf16> to vector<1x8x32xbf16>
    %129 = vector.shape_cast %128 : vector<1x8x32xbf16> to vector<8x32xbf16>
    %cst_69 = arith.constant dense<0.000000e+00> : vector<8x32xf32>
    %130 = tpu.matmul %127, %129, %cst_69 {dimension_numbers = #tpu.dot_dimension_numbers<[1], [0], [0], [1], [0, 0, 1, 1], [], []>} : vector<8x8xbf16>, vector<8x32xbf16>, vector<8x32xf32> -> vector<8x32xf32>
    %131 = arith.addf %124, %130 : vector<8x32xf32>
    %c0_70 = arith.constant 0 : index
    %c0_71 = arith.constant 0 : index
    %c0_72 = arith.constant 0 : index
    %132 = vector.load %arg10[%c0_70, %c0_71, %c0_72] : memref<1x1x32xf32, #tpu.memory_space<vmem>>, vector<1x1x32xf32>
    %133 = vector.shape_cast %132 : vector<1x1x32xf32> to vector<1x32xf32>
    %134 = vector.broadcast %133 : vector<1x32xf32> to vector<8x32xf32>
    %135 = arith.addf %131, %134 : vector<8x32xf32>
    %136 = arith.addf %135, %3 : vector<8x32xf32>
    %c0_73 = arith.constant 0 : index
    %c0_74 = arith.constant 0 : index
    %c0_75 = arith.constant 0 : index
    %137 = vector.load %arg11[%c0_73, %c0_74, %c0_75] : memref<1x1x32xf32, #tpu.memory_space<vmem>>, vector<1x1x32xf32>
    %138 = vector.shape_cast %137 : vector<1x1x32xf32> to vector<1x32xf32>
    %c0_76 = arith.constant 0 : index
    %c0_77 = arith.constant 0 : index
    %c0_78 = arith.constant 0 : index
    %139 = vector.load %arg12[%c0_76, %c0_77, %c0_78] : memref<1x1x32xf32, #tpu.memory_space<vmem>>, vector<1x1x32xf32>
    %140 = vector.shape_cast %139 : vector<1x1x32xf32> to vector<1x32xf32>
    %cst_79 = arith.constant dense<0.000000e+00> : vector<8xf32>
    %141 = vector.multi_reduction <add>, %136, %cst_79 [1] : vector<8x32xf32> to vector<8xf32>
    %142 = vector.shape_cast %141 : vector<8xf32> to vector<8x1xf32>
    %cst_80 = arith.constant 3.200000e+01 : f32
    %143 = vector.broadcast %cst_80 : f32 to vector<8x1xf32>
    %144 = arith.divf %142, %143 : vector<8x1xf32>
    %145 = vector.broadcast %144 : vector<8x1xf32> to vector<8x32xf32>
    %146 = arith.subf %136, %145 : vector<8x32xf32>
    %147 = arith.mulf %146, %146 : vector<8x32xf32>
    %cst_81 = arith.constant dense<0.000000e+00> : vector<8xf32>
    %148 = vector.multi_reduction <add>, %147, %cst_81 [1] : vector<8x32xf32> to vector<8xf32>
    %149 = vector.shape_cast %148 : vector<8xf32> to vector<8x1xf32>
    %cst_82 = arith.constant 3.200000e+01 : f32
    %150 = vector.broadcast %cst_82 : f32 to vector<8x1xf32>
    %151 = arith.divf %149, %150 : vector<8x1xf32>
    %152 = vector.broadcast %144 : vector<8x1xf32> to vector<8x32xf32>
    %153 = arith.subf %136, %152 : vector<8x32xf32>
    %cst_83 = arith.constant 9.99999974E-6 : f32
    %154 = vector.broadcast %cst_83 : f32 to vector<8x1xf32>
    %155 = arith.addf %151, %154 : vector<8x1xf32>
    %156 = math.rsqrt %155 : vector<8x1xf32>
    %157 = vector.broadcast %156 : vector<8x1xf32> to vector<8x32xf32>
    %158 = arith.mulf %153, %157 : vector<8x32xf32>
    %159 = vector.broadcast %138 : vector<1x32xf32> to vector<8x32xf32>
    %160 = arith.mulf %158, %159 : vector<8x32xf32>
    %161 = vector.broadcast %140 : vector<1x32xf32> to vector<8x32xf32>
    %162 = arith.addf %160, %161 : vector<8x32xf32>
    %163 = arith.truncf %162 : vector<8x32xf32> to vector<8x32xbf16>
    %c0_84 = arith.constant 0 : index
    %c0_85 = arith.constant 0 : index
    %c0_86 = arith.constant 0 : index
    %164 = vector.load %arg13[%c0_84, %c0_85, %c0_86] : memref<1x32x64xbf16, #tpu.memory_space<vmem>>, vector<1x32x64xbf16>
    %165 = vector.shape_cast %164 : vector<1x32x64xbf16> to vector<32x64xbf16>
    %cst_87 = arith.constant dense<0.000000e+00> : vector<8x64xf32>
    %166 = tpu.matmul %163, %165, %cst_87 {dimension_numbers = #tpu.dot_dimension_numbers<[1], [0], [0], [1], [0, 0, 1, 1], [], []>} : vector<8x32xbf16>, vector<32x64xbf16>, vector<8x64xf32> -> vector<8x64xf32>
    %c0_88 = arith.constant 0 : index
    %c0_89 = arith.constant 0 : index
    %c0_90 = arith.constant 0 : index
    %167 = vector.load %arg14[%c0_88, %c0_89, %c0_90] : memref<1x1x64xf32, #tpu.memory_space<vmem>>, vector<1x1x64xf32>
    %168 = vector.shape_cast %167 : vector<1x1x64xf32> to vector<1x64xf32>
    %169 = vector.broadcast %168 : vector<1x64xf32> to vector<8x64xf32>
    %170 = arith.addf %166, %169 : vector<8x64xf32>
    %171 = arith.mulf %170, %170 : vector<8x64xf32>
    %172 = arith.mulf %170, %171 : vector<8x64xf32>
    %cst_91 = arith.constant 4.471500e-02 : f32
    %173 = vector.broadcast %cst_91 : f32 to vector<8x64xf32>
    %174 = arith.mulf %173, %172 : vector<8x64xf32>
    %175 = arith.addf %170, %174 : vector<8x64xf32>
    %cst_92 = arith.constant 0.797884583 : f32
    %176 = vector.broadcast %cst_92 : f32 to vector<8x64xf32>
    %177 = arith.mulf %176, %175 : vector<8x64xf32>
    %178 = math.tanh %177 : vector<8x64xf32>
    %cst_93 = arith.constant 1.000000e+00 : f32
    %179 = vector.broadcast %cst_93 : f32 to vector<8x64xf32>
    %180 = arith.addf %179, %178 : vector<8x64xf32>
    %cst_94 = arith.constant 5.000000e-01 : f32
    %181 = vector.broadcast %cst_94 : f32 to vector<8x64xf32>
    %182 = arith.mulf %181, %180 : vector<8x64xf32>
    %183 = arith.mulf %170, %182 : vector<8x64xf32>
    %184 = arith.truncf %183 : vector<8x64xf32> to vector<8x64xbf16>
    %c0_95 = arith.constant 0 : index
    %c0_96 = arith.constant 0 : index
    %c0_97 = arith.constant 0 : index
    %185 = vector.load %arg15[%c0_95, %c0_96, %c0_97] : memref<1x64x32xbf16, #tpu.memory_space<vmem>>, vector<1x64x32xbf16>
    %186 = vector.shape_cast %185 : vector<1x64x32xbf16> to vector<64x32xbf16>
    %cst_98 = arith.constant dense<0.000000e+00> : vector<8x32xf32>
    %187 = tpu.matmul %184, %186, %cst_98 {dimension_numbers = #tpu.dot_dimension_numbers<[1], [0], [0], [1], [0, 0, 1, 1], [], []>} : vector<8x64xbf16>, vector<64x32xbf16>, vector<8x32xf32> -> vector<8x32xf32>
    %c0_99 = arith.constant 0 : index
    %c0_100 = arith.constant 0 : index
    %c0_101 = arith.constant 0 : index
    %188 = vector.load %arg16[%c0_99, %c0_100, %c0_101] : memref<1x1x32xf32, #tpu.memory_space<vmem>>, vector<1x1x32xf32>
    %189 = vector.shape_cast %188 : vector<1x1x32xf32> to vector<1x32xf32>
    %190 = vector.broadcast %189 : vector<1x32xf32> to vector<8x32xf32>
    %191 = arith.addf %187, %190 : vector<8x32xf32>
    %192 = arith.addf %191, %162 : vector<8x32xf32>
    %c0_102 = arith.constant 0 : index
    %c0_103 = arith.constant 0 : index
    %c0_104 = arith.constant 0 : index
    %193 = vector.load %arg17[%c0_102, %c0_103, %c0_104] : memref<1x1x32xf32, #tpu.memory_space<vmem>>, vector<1x1x32xf32>
    %194 = vector.shape_cast %193 : vector<1x1x32xf32> to vector<1x32xf32>
    %c0_105 = arith.constant 0 : index
    %c0_106 = arith.constant 0 : index
    %c0_107 = arith.constant 0 : index
    %195 = vector.load %arg18[%c0_105, %c0_106, %c0_107] : memref<1x1x32xf32, #tpu.memory_space<vmem>>, vector<1x1x32xf32>
    %196 = vector.shape_cast %195 : vector<1x1x32xf32> to vector<1x32xf32>
    %cst_108 = arith.constant dense<0.000000e+00> : vector<8xf32>
    %197 = vector.multi_reduction <add>, %192, %cst_108 [1] : vector<8x32xf32> to vector<8xf32>
    %198 = vector.shape_cast %197 : vector<8xf32> to vector<8x1xf32>
    %cst_109 = arith.constant 3.200000e+01 : f32
    %199 = vector.broadcast %cst_109 : f32 to vector<8x1xf32>
    %200 = arith.divf %198, %199 : vector<8x1xf32>
    %201 = vector.broadcast %200 : vector<8x1xf32> to vector<8x32xf32>
    %202 = arith.subf %192, %201 : vector<8x32xf32>
    %203 = arith.mulf %202, %202 : vector<8x32xf32>
    %cst_110 = arith.constant dense<0.000000e+00> : vector<8xf32>
    %204 = vector.multi_reduction <add>, %203, %cst_110 [1] : vector<8x32xf32> to vector<8xf32>
    %205 = vector.shape_cast %204 : vector<8xf32> to vector<8x1xf32>
    %cst_111 = arith.constant 3.200000e+01 : f32
    %206 = vector.broadcast %cst_111 : f32 to vector<8x1xf32>
    %207 = arith.divf %205, %206 : vector<8x1xf32>
    %208 = vector.broadcast %200 : vector<8x1xf32> to vector<8x32xf32>
    %209 = arith.subf %192, %208 : vector<8x32xf32>
    %cst_112 = arith.constant 9.99999974E-6 : f32
    %210 = vector.broadcast %cst_112 : f32 to vector<8x1xf32>
    %211 = arith.addf %207, %210 : vector<8x1xf32>
    %212 = math.rsqrt %211 : vector<8x1xf32>
    %213 = vector.broadcast %212 : vector<8x1xf32> to vector<8x32xf32>
    %214 = arith.mulf %209, %213 : vector<8x32xf32>
    %215 = vector.broadcast %194 : vector<1x32xf32> to vector<8x32xf32>
    %216 = arith.mulf %214, %215 : vector<8x32xf32>
    %217 = vector.broadcast %196 : vector<1x32xf32> to vector<8x32xf32>
    %218 = arith.addf %216, %217 : vector<8x32xf32>
    %c0_113 = arith.constant 0 : index
    %c0_114 = arith.constant 0 : index
    %219 = vector.load %arg25[%c0_113, %c0_114] : memref<8x32xf32, #tpu.memory_space<vmem>>, vector<8x32xf32>
    tpu.vector_store %arg25[%c0_113, %c0_114], %218 {strides = array<i32>} : memref<8x32xf32, #tpu.memory_space<vmem>>, vector<8x32xf32>,
    %c1_i32 = arith.constant 1 : i32
    %220 = arith.cmpi eq, %arg1, %c1_i32 : i32
    %221 = arith.extui %220 : i1 to i32
    %c0_i32_115 = arith.constant 0 : i32
    %222 = arith.cmpi ne, %221, %c0_i32_115 : i32
    scf.if %222 {
      %223 = vector.extract_strided_slice %218 {offsets = [0, 0], sizes = [1, 32], strides = [1, 1]} : vector<8x32xf32> to vector<1x32xf32>
      %224 = arith.truncf %223 : vector<1x32xf32> to vector<1x32xbf16>
      %c0_116 = arith.constant 0 : index
      %c0_117 = arith.constant 0 : index
      %225 = vector.load %arg19[%c0_116, %c0_117] : memref<32x32xbf16, #tpu.memory_space<vmem>>, vector<32x32xbf16>
      %cst_118 = arith.constant dense<0.000000e+00> : vector<1x32xf32>
      %226 = tpu.matmul %224, %225, %cst_118 {dimension_numbers = #tpu.dot_dimension_numbers<[1], [0], [0], [1], [0, 0, 1, 1], [], []>} : vector<1x32xbf16>, vector<32x32xbf16>, vector<1x32xf32> -> vector<1x32xf32>
      %c0_119 = arith.constant 0 : index
      %c0_120 = arith.constant 0 : index
      %227 = vector.load %arg20[%c0_119, %c0_120] : memref<1x32xf32, #tpu.memory_space<vmem>>, vector<1x32xf32>
      %228 = arith.addf %226, %227 : vector<1x32xf32>
      %229 = math.tanh %228 : vector<1x32xf32>
      %230 = arith.truncf %229 : vector<1x32xf32> to vector<1x32xbf16>
      %c0_121 = arith.constant 0 : index
      %c0_122 = arith.constant 0 : index
      %231 = vector.load %arg21[%c0_121, %c0_122] : memref<32x3xbf16, #tpu.memory_space<vmem>>, vector<32x3xbf16>
      %cst_123 = arith.constant dense<0.000000e+00> : vector<1x3xf32>
      %232 = tpu.matmul %230, %231, %cst_123 {dimension_numbers = #tpu.dot_dimension_numbers<[1], [0], [0], [1], [0, 0, 1, 1], [], []>} : vector<1x32xbf16>, vector<32x3xbf16>, vector<1x3xf32> -> vector<1x3xf32>
      %c0_124 = arith.constant 0 : index
      %c0_125 = arith.constant 0 : index
      %233 = vector.load %arg22[%c0_124, %c0_125] : memref<1x3xf32, #tpu.memory_space<vmem>>, vector<1x3xf32>
      %234 = arith.addf %232, %233 : vector<1x3xf32>
      %c0_126 = arith.constant 0 : index
      %c0_127 = arith.constant 0 : index
      %c0_128 = arith.constant 0 : index
      %235 = vector.load %arg23[%c0_126, %c0_127, %c0_128] : memref<1x1x3xf32, #tpu.memory_space<vmem>>, vector<1x1x3xf32>
      %236 = vector.shape_cast %235 : vector<1x1x3xf32> to vector<1x3xf32>
      %237 = vector.shape_cast %234 : vector<1x3xf32> to vector<1x1x3xf32>
      tpu.vector_store %arg23[%c0_126, %c0_127, %c0_128], %237 {strides = array<i32>} : memref<1x1x3xf32, #tpu.memory_space<vmem>>, vector<1x1x3xf32>,
      %cst_129 = arith.constant dense<0xFF800000> : vector<1xf32>
      %238 = vector.multi_reduction <maximumf>, %234, %cst_129 [1] : vector<1x3xf32> to vector<1xf32>
      %239 = vector.shape_cast %238 : vector<1xf32> to vector<1x1xf32>
      %240 = vector.broadcast %239 : vector<1x1xf32> to vector<1x3xf32>
      %241 = arith.subf %234, %240 : vector<1x3xf32>
      %242 = math.exp %241 : vector<1x3xf32>
      %cst_130 = arith.constant dense<0.000000e+00> : vector<1xf32>
      %243 = vector.multi_reduction <add>, %242, %cst_130 [1] : vector<1x3xf32> to vector<1xf32>
      %244 = vector.shape_cast %243 : vector<1xf32> to vector<1x1xf32>
      %245 = math.log %244 : vector<1x1xf32>
      %246 = arith.addf %245, %239 : vector<1x1xf32>
      %c0_131 = arith.constant 0 : index
      %c0_132 = arith.constant 0 : index
      %c0_133 = arith.constant 0 : index
      %247 = vector.load %arg4[%c0_131, %c0_132, %c0_133] : memref<1x1x3xf32, #tpu.memory_space<vmem>>, vector<1x1x3xf32>
      %248 = vector.shape_cast %247 : vector<1x1x3xf32> to vector<1x3xf32>
      %249 = arith.mulf %248, %234 : vector<1x3xf32>
      %cst_134 = arith.constant dense<0.000000e+00> : vector<1xf32>
      %250 = vector.multi_reduction <add>, %249, %cst_134 [1] : vector<1x3xf32> to vector<1xf32>
      %251 = vector.shape_cast %250 : vector<1xf32> to vector<1x1xf32>
      %252 = arith.subf %246, %251 : vector<1x1xf32>
      %c0_135 = arith.constant 0 : index
      %c0_136 = arith.constant 0 : index
      %c0_137 = arith.constant 0 : index
      %253 = vector.load %arg24[%c0_135, %c0_136, %c0_137] : memref<1x1x1xf32, #tpu.memory_space<vmem>>, vector<1x1x1xf32>
      %254 = vector.shape_cast %253 : vector<1x1x1xf32> to vector<1x1xf32>
      %255 = vector.shape_cast %252 : vector<1x1xf32> to vector<1x1x1xf32>
      tpu.vector_store %arg24[%c0_135, %c0_136, %c0_137], %255 {strides = array<i32>} : memref<1x1x1xf32, #tpu.memory_space<vmem>>, vector<1x1x1xf32>,
    } else {
    }
    return
  }
  func.func @transform_0(%arg0: i32, %arg1: i32) -> (i32, i32, i32) {
    %c0_i32 = arith.constant 0 : i32
    %c0_i32_0 = arith.constant 0 : i32
    %c0_i32_1 = arith.constant 0 : i32
    return %arg0, %c0_i32, %c0_i32_0 : i32, i32, i32
  }
  func.func @transform_1(%arg0: i32, %arg1: i32) -> (i32, i32, i32) {
    %c0_i32 = arith.constant 0 : i32
    %c0_i32_0 = arith.constant 0 : i32
    %c0_i32_1 = arith.constant 0 : i32
    return %arg0, %c0_i32, %c0_i32_0 : i32, i32, i32
  }
  func.func @transform_2(%arg0: i32, %arg1: i32) -> (i32, i32, i32) {
    %c0_i32 = arith.constant 0 : i32
    %c0_i32_0 = arith.constant 0 : i32
    %c0_i32_1 = arith.constant 0 : i32
    return %arg0, %c0_i32, %c0_i32_0 : i32, i32, i32
  }
  func.func @transform_3(%arg0: i32, %arg1: i32) -> (i32, i32) {
    %c0_i32 = arith.constant 0 : i32
    %c0_i32_0 = arith.constant 0 : i32
    %c0_i32_1 = arith.constant 0 : i32
    return %c0_i32, %c0_i32_0 : i32, i32
  }
  func.func @transform_4(%arg0: i32, %arg1: i32) -> (i32, i32) {
    %c0_i32 = arith.constant 0 : i32
    %c0_i32_0 = arith.constant 0 : i32
    %c0_i32_1 = arith.constant 0 : i32
    return %c0_i32, %c0_i32_0 : i32, i32
  }
  func.func @transform_5(%arg0: i32, %arg1: i32) -> (i32, i32, i32) {
    %c0_i32 = arith.constant 0 : i32
    %c0_i32_0 = arith.constant 0 : i32
    %c0_i32_1 = arith.constant 0 : i32
    return %arg1, %c0_i32, %c0_i32_0 : i32, i32, i32
  }
  func.func @transform_6(%arg0: i32, %arg1: i32) -> (i32, i32, i32) {
    %c0_i32 = arith.constant 0 : i32
    %c0_i32_0 = arith.constant 0 : i32
    %c0_i32_1 = arith.constant 0 : i32
    return %arg1, %c0_i32, %c0_i32_0 : i32, i32, i32
  }
  func.func @transform_7(%arg0: i32, %arg1: i32) -> (i32, i32, i32, i32) {
    %c0_i32 = arith.constant 0 : i32
    %c0_i32_0 = arith.constant 0 : i32
    %c0_i32_1 = arith.constant 0 : i32
    %c0_i32_2 = arith.constant 0 : i32
    return %arg1, %c0_i32, %c0_i32_0, %c0_i32_1 : i32, i32, i32, i32
  }
  func.func @transform_8(%arg0: i32, %arg1: i32) -> (i32, i32, i32) {
    %c0_i32 = arith.constant 0 : i32
    %c0_i32_0 = arith.constant 0 : i32
    %c0_i32_1 = arith.constant 0 : i32
    return %arg1, %c0_i32, %c0_i32_0 : i32, i32, i32
  }
  func.func @transform_9(%arg0: i32, %arg1: i32) -> (i32, i32, i32) {
    %c0_i32 = arith.constant 0 : i32
    %c0_i32_0 = arith.constant 0 : i32
    %c0_i32_1 = arith.constant 0 : i32
    return %arg1, %c0_i32, %c0_i32_0 : i32, i32, i32
  }
  func.func @transform_10(%arg0: i32, %arg1: i32) -> (i32, i32, i32) {
    %c0_i32 = arith.constant 0 : i32
    %c0_i32_0 = arith.constant 0 : i32
    %c0_i32_1 = arith.constant 0 : i32
    return %arg1, %c0_i32, %c0_i32_0 : i32, i32, i32
  }
  func.func @transform_11(%arg0: i32, %arg1: i32) -> (i32, i32, i32) {
    %c0_i32 = arith.constant 0 : i32
    %c0_i32_0 = arith.constant 0 : i32
    %c0_i32_1 = arith.constant 0 : i32
    return %arg1, %c0_i32, %c0_i32_0 : i32, i32, i32
  }
  func.func @transform_12(%arg0: i32, %arg1: i32) -> (i32, i32, i32) {
    %c0_i32 = arith.constant 0 : i32
    %c0_i32_0 = arith.constant 0 : i32
    %c0_i32_1 = arith.constant 0 : i32
    return %arg1, %c0_i32, %c0_i32_0 : i32, i32, i32
  }
  func.func @transform_13(%arg0: i32, %arg1: i32) -> (i32, i32, i32) {
    %c0_i32 = arith.constant 0 : i32
    %c0_i32_0 = arith.constant 0 : i32
    %c0_i32_1 = arith.constant 0 : i32
    return %arg1, %c0_i32, %c0_i32_0 : i32, i32, i32
  }
  func.func @transform_14(%arg0: i32, %arg1: i32) -> (i32, i32, i32) {
    %c0_i32 = arith.constant 0 : i32
    %c0_i32_0 = arith.constant 0 : i32
    %c0_i32_1 = arith.constant 0 : i32
    return %arg1, %c0_i32, %c0_i32_0 : i32, i32, i32
  }
  func.func @transform_15(%arg0: i32, %arg1: i32) -> (i32, i32, i32) {
    %c0_i32 = arith.constant 0 : i32
    %c0_i32_0 = arith.constant 0 : i32
    %c0_i32_1 = arith.constant 0 : i32
    return %arg1, %c0_i32, %c0_i32_0 : i32, i32, i32
  }
  func.func @transform_16(%arg0: i32, %arg1: i32) -> (i32, i32, i32) {
    %c0_i32 = arith.constant 0 : i32
    %c0_i32_0 = arith.constant 0 : i32
    %c0_i32_1 = arith.constant 0 : i32
    return %arg1, %c0_i32, %c0_i32_0 : i32, i32, i32
  }
  func.func @transform_17(%arg0: i32, %arg1: i32) -> (i32, i32) {
    %c0_i32 = arith.constant 0 : i32
    %c0_i32_0 = arith.constant 0 : i32
    %c0_i32_1 = arith.constant 0 : i32
    return %c0_i32, %c0_i32_0 : i32, i32
  }
  func.func @transform_18(%arg0: i32, %arg1: i32) -> (i32, i32) {
    %c0_i32 = arith.constant 0 : i32
    %c0_i32_0 = arith.constant 0 : i32
    %c0_i32_1 = arith.constant 0 : i32
    return %c0_i32, %c0_i32_0 : i32, i32
  }
  func.func @transform_19(%arg0: i32, %arg1: i32) -> (i32, i32) {
    %c0_i32 = arith.constant 0 : i32
    %c0_i32_0 = arith.constant 0 : i32
    %c0_i32_1 = arith.constant 0 : i32
    return %c0_i32, %c0_i32_0 : i32, i32
  }
  func.func @transform_20(%arg0: i32, %arg1: i32) -> (i32, i32) {
    %c0_i32 = arith.constant 0 : i32
    %c0_i32_0 = arith.constant 0 : i32
    %c0_i32_1 = arith.constant 0 : i32
    return %c0_i32, %c0_i32_0 : i32, i32
  }
  func.func @transform_21(%arg0: i32, %arg1: i32) -> (i32, i32, i32) {
    %c0_i32 = arith.constant 0 : i32
    %c0_i32_0 = arith.constant 0 : i32
    %c0_i32_1 = arith.constant 0 : i32
    return %arg0, %c0_i32, %c0_i32_0 : i32, i32, i32
  }
  func.func @transform_22(%arg0: i32, %arg1: i32) -> (i32, i32, i32) {
    %c0_i32 = arith.constant 0 : i32
    %c0_i32_0 = arith.constant 0 : i32
    %c0_i32_1 = arith.constant 0 : i32
    return %arg0, %c0_i32, %c0_i32_0 : i32, i32, i32
  }
}

</mosaic_0001>

<bundles_post_ra>
// kernel: phobert_forward.1
= control target key start
LH: loop header
LB: loop body
LE: loop exit
PB: predicated region body
PF: predicated region fallthrough
CT: control target
= control target key end

     0   :  { %s3346_s0 = inlined_call_operand.vmem [shape: f32[2,8,32], index: 0, kind: input, shape index: {}]   ;;  %s3347_s1 = inlined_call_operand.vmem [shape: f32[2,1,8], index: 1, kind: input, shape index: {}]   ;;  %s3348_s2 = inlined_call_operand.vmem [shape: f32[2,1,3], index: 2, kind: input, shape index: {}]   ;;  %s3349_s3 = inlined_call_operand.vmem [shape: f32[1,32], index: 3, kind: input, shape index: {}]   ;;  %s3350_s4 = inlined_call_operand.vmem [shape: f32[1,32], index: 4, kind: input, shape index: {}]   ;;  %s3351_s5 = inlined_call_operand.vmem [shape: bf16[2,32,96], index: 5, kind: input, shape index: {}]   ;;  %s3352_s6 = inlined_call_operand.vmem [shape: f32[2,1,96], index: 6, kind: input, shape index: {}]   ;;  %s3353_s7 = inlined_call_operand.vmem [shape: bf16[2,4,8,32], index: 7, kind: input, shape index: {}]   ;;  %s3354_s8 = inlined_call_operand.vmem [shape: f32[2,1,32], index: 8, kind: input, shape index: {}]   ;;  %s3355_s9 = inlined_call_operand.vmem [shape: f32[2,1,32], index: 9, kind: input, shape index: {}]   ;;  %s3356_s10 = inlined_call_operand.vmem [shape: f32[2,1,32], index: 10, kind: input, shape index: {}]   ;;  %s3357_s11 = inlined_call_operand.vmem [shape: bf16[2,32,64], index: 11, kind: input, shape index: {}]   ;;  %s3358_s12 = inlined_call_operand.vmem [shape: f32[2,1,64], index: 12, kind: input, shape index: {}]   ;;  %s3359_s13 = inlined_call_operand.vmem [shape: bf16[2,64,32], index: 13, kind: input, shape index: {}]   ;;  %s3360_s14 = inlined_call_operand.vmem [shape: f32[2,1,32], index: 14, kind: input, shape index: {}]   ;;  %s3361_s15 = inlined_call_operand.vmem [shape: f32[2,1,32], index: 15, kind: input, shape index: {}]   ;;  %s3362_s16 = inlined_call_operand.vmem [shape: f32[2,1,32], index: 16, kind: input, shape index: {}]   ;;  %s3363_s17 = inlined_call_operand.vmem [shape: bf16[32,32], index: 17, kind: input, shape index: {}]   ;;  %s3364_s18 = inlined_call_operand.vmem [shape: f32[1,32], index: 18, kind: input, shape index: {}]   ;;  %s3365_s19 = inlined_call_operand.vmem [shape: bf16[32,3], index: 19, kind: input, shape index: {}]   ;;  %s3366_s20 = inlined_call_operand.vmem [shape: f32[1,3], index: 20, kind: input, shape index: {}]   ;;  %s3367_s21 = inlined_call_operand.hbm [shape: f32[2,1,3], index: 21, kind: output, shape index: {0}]   ;;  %s3368_s22 = inlined_call_operand.vmem [shape: f32[2,1,1], index: 22, kind: output, shape index: {1}]  }
   0x1   :  { %3384 = sst [smem:[#allocation21_spill]] %s3346_s0 }
   0x2   :  { %3385 = sst [smem:[#allocation22_spill]] %s3347_s1 }
   0x3   :  { %3386 = sst [smem:[#allocation23_spill]] %s3348_s2 }
   0x4   :  { %3387 = sst [smem:[#allocation24_spill]] %s3349_s3 }
   0x5   :  { %3388 = sst [smem:[#allocation25_spill]] %s3350_s4 }
   0x6   :  { %3389 = sst [smem:[#allocation26_spill]] %s3351_s5 }
   0x7   :  { %3390 = sst [smem:[#allocation27_spill]] %s3352_s6 }
   0x8   :  { %3391 = sst [smem:[#allocation28_spill]] %s3353_s7 }
   0x9   :  { %3392 = sst [smem:[#allocation29_spill]] %s3356_s10 }
   0xa   :  { %3393 = sst [smem:[#allocation30_spill]] %s3357_s11 }
   0xb   :  { %3394 = sst [smem:[#allocation31_spill]] %s3358_s12 }
   0xc   :  { %3395 = sst [smem:[#allocation32_spill]] %s3362_s16 }
   0xd   :  { %3396 = sst [smem:[#allocation33_spill]] %s3363_s17 }
   0xe   :  { %3397 = sst [smem:[#allocation34_spill]] %s3364_s18 }
   0xf   :  { %3398 = sst [smem:[#allocation35_spill]] %s3365_s19 }
  0x10   :  { %3399 = sst [smem:[#allocation36_spill]] %s3366_s20 }
  0x11   :  { %3400 = sst [smem:[#allocation37_spill]] %s3367_s21 }
  0x12   :  { %3401 = sst [smem:[#allocation38_spill]] %s3368_s22 }
  0x13   :  { %28 = vsyncpa [#allocation7], 0 }
  0x14   :  { %30 = vsyncpa [#allocation7 + $0x1], 0  ;;  %s2921_s3 = smov 0   ;;  %s2923_s28 = smov 0  }
  0x15   :  { %s2925_s29 = smov 0   ;;  %s2927_s30 = smov 0  }
  0x16   :  { %s2929_s4 = smov 0   ;;  %s2931_s0 = smov 0  }
  0x17   :  { %s2933_s23 = smov 0   ;;  %s2935_s1 = smov 0  }
  0x18 LB: > { %3402 = sst [smem:[#allocation9_spill]] %s2760_s3  ;;  %s2342_s5 = sadd.s32 4294967295, %s2788_s1   ;;  %s2788_s1 = sphi %s2935_s1, %s36_s1   ;;  %s2784_s23 = sphi %s2933_s23, %s3462_s23   ;;  %s2780_s0 = sphi %s2931_s0, %s3461_s0   ;;  %s2776_s4 = sphi %s2929_s4, %s3460_s4   ;;  %s2772_s30 = sphi %s2927_s30, %s3459_s30   ;;  %s2768_s29 = sphi %s2925_s29, %s3458_s29   ;;  %s2764_s28 = sphi %s2923_s28, %s3464_s28   ;;  %s2760_s3 = sphi %s2921_s3, %s3463_s3  }
  0x19   : > { %3403 = sst [smem:[#allocation10_spill]] %s2768_s29  ;;  %s2343_s24 = sadd.s32 4294967294, %s2788_s1  }
  0x1a   : > { %3404 = sst [smem:[#allocation11_spill]] %s2772_s30  ;;  %s45_s6 = sadd.s32 1, %s2780_s0 }
  0x1b   : > { %3405 = sst [smem:[#allocation12_spill]] %s2776_s4  ;;  %p46_p0 = scmp.ge.s32.totalorder %s45_s6, 2 }
  0x1c   : > { %3406 = sst [smem:[#allocation13_spill]] %s2780_s0  ;;  %s48_s25 = sadd.s32 1, %s2784_s23 }
  0x1d   : > { %3407 = sst [smem:[#allocation14_spill]] %s2784_s23  ;;  %p581_p1 = scmp.ne.s32.totalorder %s2768_s29, %s2764_s28 }
  0x1e   : > { %3408 = sst [smem:[#allocation15_spill]] %s2788_s1  ;;  %p582_p2 = scmp.eq.s32.totalorder %s2342_s5, 3 }
  0x1f   : > { %s3466_s6 = smov (%p46_p0, %s45_s6), 0  ;;  %s3468_s25 = smov (!%p46_p0, %s48_s25), %s2784_s23 }
  0x20   : > { %3409 = sst [smem:[#allocation16_spill]] %s3466_s6  ;;  %p2970_p3 = por %p582_p2, %p581_p1 }
  0x21   : > { %p587_p4 = scmp.ne.s32.totalorder %s2764_s28, %s2760_s3  ;;  %p50_p5 = scmp.ge.s32.totalorder %s3468_s25, 2 }
  0x22   : > { %s3410_s26 = scalar_select %p2970_p3, 1, 0 }
  0x23   : > { %p588_p6 = scmp.eq.s32.totalorder %s2343_s24, 3  ;;  %p2346_p7 = scmp.ge.s32.totalorder %s2788_s1, 1 }
  0x24   : > { %3411 = sst [smem:[#allocation17_spill]] %s3410_s26  ;;  %p749_p8 = scmp.lt.s32.totalorder %s2788_s1, 5 }
  0x25   : > { %s3470_s25 = smov (%p50_p5, %s3468_s25), 0  ;;  %p2980_p9 = por %p588_p6, %p587_p4 }
  0x26   : > { %3412 = sst [smem:[#allocation18_spill]] %s3470_s25  ;;  %p750_p10 = pnand %p2346_p7, %p749_p8 }
  0x27   : > { %s3413_s2 = scalar_select %p2980_p9, 1, 0 }
  0x28   : > { %s568_s27 = ssub.s32 %s2784_s23, %s3470_s25  ;;  %s571_s5 = sadd.s32 1, %s2768_s29 }
  0x29   : > { %3414 = sst [smem:[#allocation19_spill]] %s3413_s2  ;;  %p569_p11 = scmp.eq.s32.totalorder %s568_s27, 0 }
  0x2a   : > { %753 = sbr.rel (%p750_p10) target bundleno = 3588 (0xe04), region = 104  ;;  %p862_p12 = scmp.lt.s32.totalorder (!%p750_p10), %s2776_s4, 1 }
  0x2b   : > { %s2988_s6 = scalar_select %p569_p11, %s2768_s29, %s571_s5  }
  0x2c   : > { %p872_p13 = scmp.lt.s32.totalorder (!%p750_p10), %s2772_s30, 1  ;;  %s3417_s3 = sld [smem:[#allocation21_spill]] (!%p750_p10) }
  0x2d   : > { %3415 = sst [smem:[#allocation20_spill]] %s2988_s6  ;;  %s3420_s5 = sld [smem:[#allocation26_spill]] (!%p750_p10) }
  0x2e   : > { %s3421_s7 = sld [smem:[#allocation28_spill]] (!%p750_p10)  ;;  %s3423_s11 = sld [smem:[#allocation30_spill]] (!%p750_p10) }
  0x2f   : > { %s3425_s20 = sld [smem:[#allocation32_spill]] (!%p750_p10)  ;;  %s3426_s22 = sld [smem:[#allocation38_spill]] (!%p750_p10) }
  0x30   : > { %s3427_s10 = sand.u32 (!%p750_p10), 1, %s2764_s28  }
  0x31   : > { %s2994_s0 = scalar_select %p862_p12, %s2776_s4, 1 }
  0x32   : > { %s2997_s2 = scalar_select %p872_p13, %s2772_s30, 1 }
  0x33   : > { %s2347_s27 = sshll.u32 %s2994_s0, 3  ;;  %s3071_s6 = scalar_lea.vmem [#allocation6], %s3427_s10 }
  0x34   : > { %s865_s1 = scalar_lea.vmem %s3417_s3, %s2347_s27  ;;  %s2403_s18 = sshll.u32 %s2997_s2, 4 }
  0x35   : > { %s3019_s25 = scalar_lea.vmem %s3420_s5, %s2403_s18  ;;  %s3024_s3 = scalar_lea.vmem %s3421_s7, %s2403_s18 }
  0x36   : > { %s3041_s5 = scalar_lea.vmem %s3423_s11, %s2403_s18  ;;  %s2406_s7 = sshll.u32 %s2997_s2, 5 }
  0x37   : > { %s3051_s4 = scalar_lea.vmem %s3359_s13, %s2406_s7  ;;  %s909_s17 = scalar_lea.vmem %s3360_s14, %s2997_s2 }
  0x38   : > { %s912_s16 = scalar_lea.vmem %s3361_s15, %s2997_s2  ;;  %s915_s11 = scalar_lea.vmem %s3425_s20, %s2997_s2 }
  0x39   : > { %s918_s12 = scalar_lea.vmem %s3426_s22, %s2994_s0  ;;  %s3428_s7 = sld [smem:[#allocation11_spill]] }
  0x3f   : > { %p2356_p0 = scmp.ne.s32.totalorder %s3428_s7, 0 }
  0x40   : > { %v924_v0 = vld [vmem:[%s865_s1] sm:$0xff] (!%p2356_p0)  ;;  %vm927_vm0 = vcmask (!%p2356_p0), 261120   ;;  %s3429_s22 = sld [smem:[#allocation24_spill]] (!%p2356_p0)  ;;  %s3430_s21 = sld [smem:[#allocation25_spill]] (!%p2356_p0) }
  0x41   : > { %923 = sbr.rel (%p2356_p0) target bundleno = 379 (0x17b), region = 108  ;;  %v928_v1 = vsel (!%p2356_p0), %vm927_vm0, %v924_v0, 0.0 }
  0x42   : > { %929 = vadd.xlane.f32.xlu0 (!%p2356_p0), %v928_v1 }
  0x46   : > { %v2357_v11 = vld [vmem:[%s3429_s22] ss:$0 sm:$0xff] (!%p2356_p0) }
  0x47   : > { %v2358_v13 = vld [vmem:[%s3430_s21] ss:$0 sm:$0xff] (!%p2356_p0) }
  0xcf   : > { %v930_v2 = vpop.xlane.xlu0 %929 }
  0xd0   : > { %v932_v3 = vmul.f32 0.03125, %v930_v2 }
  0xd2   : > { %v933_v4 = vsub.f32 %v924_v0, %v932_v3 }
  0xd4   : > { %v934_v5 = vmul.f32 %v933_v4, %v933_v4 }
  0xd6   : > { %v935_v6 = vsel %vm927_vm0, %v934_v5, 0.0 }
  0xd7   : > { %936 = vadd.xlane.f32.xlu0 %v935_v6 }
 0x164   : > { %v937_v7 = vpop.xlane.xlu0 %936 }
 0x165   : > { %v938_v8 = vmul.f32 0.03125, %v937_v7 }
 0x167   : > { %v939_v9 = vadd.f32 1e-05, %v938_v8 }
 0x169   : > { %2652 = vrsqrt.f32 %v939_v9 }
 0x173   : > { %v2653_v10 = vpop.eup %2652 }
 0x174   : > { %v941_v12 = vmul.f32 %v2653_v10, %v933_v4 }
 0x176   : > { %v948_v14 = vmul.f32 %v2357_v11, %v941_v12 }
 0x178   : > { %v955_v15 = vadd.f32 %v2358_v13, %v948_v14 }
 0x17a   : > { %956 = vst.msk [vmem:[#allocation2] sm:$0xff] %vm927_vm0, %v955_v15 }
 0x17b PF: > { %v2654_v16 = vld [vmem:[%s3019_s25] sm:$0xff]   ;;  %v2790_v17 = vmov 0.0   ;;  %v2655_v18 = vld [vmem:[%s3019_s25 + $0x8] sm:$0xff]   ;;  %vm2791_vm1 = vmmov 0   ;;  %vm982_vm2 = vcmask 261120   ;;  %s3431_s27 = sld [smem:[#allocation27_spill]] }
 0x17c   : > { %2450 = vmatprep.subr.bf16.mxu1 %v2790_v17  ;;  %2464 = vmatprep.subr.bf16.mxu0 %v2790_v17  ;;  %vm1028_vm3 = vcmask 60416   ;;  %s2792_s18 = smov 96   ;;  %s2793_s24 = smov 120   ;;  %vm1109_vm4 = vcmask 64512   ;;  %vm1345_vm5 = vcmask 1043456   ;;  %vm1876_vm6 = vcmask 523264  }
 0x17d   : > { %2451 = vmatpush3.bf16.msra.mxu1 %v2654_v16  ;;  %2454 = vmatprep.mubr.msk.bf16.mxu1 %vm2791_vm1, %v2790_v17  ;;  %s2794_s23 = smov 88   ;;  %s2795_s29 = smov 80  }
 0x17e   : > { %2452 = vmatprep.subr.bf16.mxu1 %v2790_v17  ;;  %2466 = vmatprep.mubr.msk.bf16.mxu0 %vm2791_vm1, %v2790_v17  ;;  %s2796_s7 = smov 72   ;;  %s2797_s10 = smov 112  }
 0x17f   : > { %s2798_s20 = smov 104   ;;  %s3433_s30 = sld [smem:[#allocation22_spill]] }
 0x180   : > { %s2799_s25 = smov 56   ;;  %s2800_s26 = smov 64  }
 0x181   : > { %v3089_v19 = vld [vmem:[#allocation2] sm:$0xff]  ;;  %2453 = vmatpush3.bf16.msra.mxu1 %v2655_v18  ;;  %s3432_s19 = scalar_lea.vmem %s3431_s27, %s2997_s2  ;;  %s2801_s27 = smov 48  }
 0x182   : > { %v958_v20 = vpack.c.bf16 %v3089_v19, %v3089_v19  ;;  %2458 = vmatprep.subr.bf16.mxu1 %v2790_v17  ;;  %v2359_v21 = vld [vmem:[%s3432_s19] ss:$0 sm:$0xff]  ;;  %s2802_s19 = smov 40   ;;  %s3437_s22 = sld [smem:[#allocation29_spill]] }
 0x184   : > { %2455 = vmatmul.mubr.msk.bf16.vlgmr.msra.gmra.mrb[0].mxu1 %vm982_vm2, %v958_v20 }
 0x185   : > { %2460 = vmatprep.mubr.msk.bf16.mxu1 %vm2791_vm1, %v2790_v17  ;;  %s3434_s21 = scalar_lea.vmem %s3433_s30, %s2994_s0 }
 0x186   : > { %v2365_v49 = vld [vmem:[%s3434_s21] ss:$0 sm:$0xff]  ;;  %s3439_s21 = sld [smem:[#allocation31_spill]] }
 0x188   : > { %s3438_s1 = scalar_lea.vmem %s3437_s22, %s2997_s2 }
 0x257   : > { %v1020_v22 = vpop.f32.mrb[0].mxu1 }
 0x258   : > { %v1021_v23 = vadd.f32 %v2359_v21, %v1020_v22  ;;  %v2456_v24 = vpop.f32.mrb[1].mxu1 }
 0x259   : > { %v1023_v25 = vpop.f32.mrb[2].mxu1 }
 0x25a   : > { %v1026_v26 = vmul.f32 0.35355338, %v1021_v23  ;;  %v3105_v27 = vpack.c.bf16 %v1021_v23, %v1021_v23  ;;  %v2457_v28 = vpop.f32.mrb[3].mxu1 }
 0x25c   : > { %v1027_v29 = vpack.c.bf16 %v1026_v26, %v1026_v26  ;;  %1034 = vrot.lane.b32.xlu0 %v3105_v27, %s2792_s18 }
 0x25e   : > { %1029 = vst.msk [vmem:[#allocation3] sm:$0xf] %vm1028_vm3, %v1027_v29  ;;  %1045 = vrot.lane.b32.xlu1 %v1027_v29, %s2793_s24  ;;  %s3435_s24 = scalar_lea.vmem %s3354_s8, %s2997_s2 }
 0x260   : > { %1050 = vrot.lane.b32.xlu0 %v3105_v27, %s2794_s23 }
 0x262   : > { %1065 = vrot.lane.b32.xlu1 %v3105_v27, %s2795_s29 }
 0x264   : > { %1080 = vrot.lane.b32.xlu0 %v3105_v27, %s2796_s7  ;;  %s3436_s7 = scalar_lea.vmem %s3355_s9, %s2997_s2 }
 0x265   : > { %v1090_v42 = vld [vmem:[#allocation3] sm:$0xf] }
 0x266   : > { %1060 = vrot.lane.b32.xlu1 %v1027_v29, %s2797_s10 }
 0x268   : > { %1075 = vrot.lane.b32.xlu0 %v1027_v29, %s2798_s20 }
 0x2ce   : > { %v1035_v30 = vpop.permute.xlu0 %1034 }
 0x2cf   : > { %1037 = vst.msk [vmem:[#allocation4] sm:$0xf] %vm1028_vm3, %v1035_v30 }
 0x2d0   : > { %v1046_v31 = vpop.permute.xlu1 %1045 }
 0x2d1   : > { %1049 = vst.msk [vmem:[#allocation3 + $0x4] sm:$0xf] %vm1028_vm3, %v1046_v31 }
 0x2d2   : > { %v1051_v32 = vpop.permute.xlu0 %1050 }
 0x2d3   : > { %1054 = vst.msk [vmem:[#allocation4 + $0x4] sm:$0xf] %vm1028_vm3, %v1051_v32 }
 0x2d4   : > { %v1066_v33 = vpop.permute.xlu1 %1065 }
 0x2d5   : > { %1069 = vst.msk [vmem:[#allocation4 + $0x8] sm:$0xf] %vm1028_vm3, %v1066_v33 }
 0x2d6   : > { %v1081_v34 = vpop.permute.xlu0 %1080  ;;  %v1094_v35 = vld [vmem:[#allocation4] sm:$0xf] }
 0x2d7   : > { %1084 = vst.msk [vmem:[#allocation4 + $0xc] sm:$0xf] %vm1028_vm3, %v1081_v34  ;;  %v1114_v36 = vsel %vm1109_vm4, %v1094_v35, 0 }
 0x2d8   : > { %2459 = vmatpush3.bf16.xpose.msra.mxu1 %v1114_v36  ;;  %v1061_v37 = vpop.permute.xlu1 %1060  ;;  %v1091_v45 = vld [vmem:[#allocation3 + $0x4] sm:$0xf] }
 0x2d9   : > { %1064 = vst.msk [vmem:[#allocation3 + $0x8] sm:$0xf] %vm1028_vm3, %v1061_v37  ;;  %2470 = vmatprep.subr.bf16.mxu1 %v2790_v17 }
 0x2da   : > { %v1076_v38 = vpop.permute.xlu0 %1075  ;;  %v1095_v39 = vld [vmem:[#allocation4 + $0x4] sm:$0xf] }
 0x2db   : > { %1079 = vst.msk [vmem:[#allocation3 + $0xc] sm:$0xf] %vm1028_vm3, %v1076_v38  ;;  %v1160_v40 = vsel %vm1109_vm4, %v1095_v39, 0 }
 0x2dc   : > { %2465 = vmatpush3.bf16.xpose.msra.mxu0 %v1160_v40  ;;  %v1096_v41 = vld [vmem:[#allocation4 + $0x8] sm:$0xf] }
 0x2dd   : > { %2476 = vmatprep.subr.bf16.mxu0 %v2790_v17  ;;  %v1206_v43 = vsel %vm1109_vm4, %v1096_v41, 0 }
 0x2de   : > { %v1097_v44 = vld [vmem:[#allocation4 + $0xc] sm:$0xf] }
 0x2df   : > { %2461 = vmatmul.mubr.msk.bf16.vlgmr.msra.gmra.mrb[4].mxu1 %vm1109_vm4, %v1090_v42  ;;  %v1252_v46 = vsel %vm1109_vm4, %v1097_v44, 0 }
 0x2e0   : > { %2471 = vmatpush3.bf16.xpose.msra.mxu1 %v1206_v43  ;;  %2472 = vmatprep.mubr.msk.bf16.mxu1 %vm2791_vm1, %v2790_v17  ;;  %v1092_v47 = vld [vmem:[#allocation3 + $0x8] sm:$0xf] }
 0x2e1   : > { %2482 = vmatprep.subr.bf16.mxu1 %v2790_v17 }
 0x2e2   : > { %v1093_v48 = vld [vmem:[#allocation3 + $0xc] sm:$0xf] }
 0x2e3   : > { %2467 = vmatmul.mubr.msk.bf16.vlgmr.msra.gmra.mrb[0].mxu0 %vm1109_vm4, %v1091_v45 }
 0x2e4   : > { %2477 = vmatpush3.bf16.xpose.msra.mxu0 %v1252_v46  ;;  %2478 = vmatprep.mubr.msk.bf16.mxu0 %vm2791_vm1, %v2790_v17 }
 0x2e5   : > { %2488 = vmatprep.subr.bf16.mxu0 %v2790_v17 }
 0x2e7   : > { %2473 = vmatmul.mubr.msk.bf16.vlgmr.msra.gmra.mrb[8].mxu1 %vm1109_vm4, %v1092_v47 }
 0x2e8   : > { %2484 = vmatprep.mubr.msk.bf16.mxu1 %vm2791_vm1, %v2790_v17 }
 0x2eb   : > { %2479 = vmatmul.mubr.msk.bf16.vlgmr.msra.gmra.mrb[4].mxu0 %vm1109_vm4, %v1093_v48 }
 0x2ec   : > { %2490 = vmatprep.mubr.msk.bf16.mxu0 %vm2791_vm1, %v2790_v17 }
 0x3b2   : > { %v1150_v50 = vpop.f32.mrb[4].mxu1 }
 0x3b3   : > { %v1151_v51 = vadd.f32 %v2365_v49, %v1150_v50  ;;  %v2462_v52 = vpop.f32.mrb[5].mxu1 }
 0x3b4   : > { %v1153_v53 = vpop.f32.mrb[6].mxu1 }
 0x3b5   : > { %v2463_v54 = vpop.f32.mrb[7].mxu1  ;;  %v1294_v55 = vsel %vm1109_vm4, %v1151_v51, -inf }
 0x3b6   : > { %v1196_v56 = vpop.f32.mrb[0].mxu0  ;;  %1295 = vmax.xlane.f32.xlu1 %v1294_v55 }
 0x3b7   : > { %v1197_v57 = vadd.f32 %v2365_v49, %v1196_v56  ;;  %v2468_v58 = vpop.f32.mrb[1].mxu0 }
 0x3b8   : > { %v1199_v59 = vpop.f32.mrb[2].mxu0 }
 0x3b9   : > { %v2469_v60 = vpop.f32.mrb[3].mxu0  ;;  %v1297_v61 = vsel %vm1109_vm4, %v1197_v57, -inf }
 0x3ba   : > { %1298 = vmax.xlane.f32.xlu0 %v1297_v61  ;;  %v1242_v62 = vpop.f32.mrb[8].mxu1  ;;  %v1527_v60 = vld [vmem:[%s3024_s3] sm:$0xf] }
 0x3bb   : > { %v1243_v63 = vadd.f32 %v2365_v49, %v1242_v62  ;;  %v2474_v0 = vpop.f32.mrb[9].mxu1  ;;  %v1583_v61 = vsel %vm1345_vm5, %v1527_v60, 0  ;;  %v1528_v62 = vld [vmem:[%s3024_s3 + $0x4] sm:$0xf] }
 0x3bc   : > { %v1245_v1 = vpop.f32.mrb[10].mxu1  ;;  %v1530_v0 = vld [vmem:[%s3024_s3 + $0xc] sm:$0xf] }
 0x3bd   : > { %v2475_v2 = vpop.f32.mrb[11].mxu1  ;;  %v1300_v3 = vsel %vm1109_vm4, %v1243_v63, -inf }
 0x3be   : > { %v1288_v4 = vpop.f32.mrb[4].mxu0  ;;  %1301 = vmax.xlane.f32.xlu0 %v1300_v3 }
 0x3bf   : > { %v1289_v5 = vadd.f32 %v2365_v49, %v1288_v4  ;;  %v2480_v6 = vpop.f32.mrb[5].mxu0  ;;  %v1678_v4 = vsel %vm1345_vm5, %v1530_v0, 0 }
 0x3c0   : > { %v1291_v7 = vpop.f32.mrb[6].mxu0  ;;  %v1529_v6 = vld [vmem:[%s3024_s3 + $0x8] sm:$0xf] }
 0x3c1   : > { %v2481_v8 = vpop.f32.mrb[7].mxu0  ;;  %v1303_v9 = vsel %vm1109_vm4, %v1289_v5, -inf }
 0x3c2   : > { %1304 = vmax.xlane.f32.xlu1 %v1303_v9 }
 0x3d3   : > { %1055 = vrot.lane.b32.xlu1 %v3105_v27, %s2799_s25  ;;  %s3440_s25 = scalar_lea.vmem %s3439_s21, %s2997_s2 }
 0x3d4   : > { %1038 = vrot.lane.b32.xlu0 %v3105_v27, %s2800_s26 }
 0x443   : > { %v1296_v10 = vpop.xlane.xlu1 %1295 }
 0x444   : > { %v1306_v11 = vsub.f32 %v1151_v51, %v1296_v10 }
 0x446   : > { %v1310_v12 = vmul.f32 1.442695, %v1306_v11  ;;  %v1630_v11 = vsel %vm1345_vm5, %v1529_v6, 0 }
 0x447   : > { %v1299_v13 = vpop.xlane.xlu0 %1298 }
 0x448   : > { %2662 = vpow2.f32 %v1310_v12  ;;  %v1307_v14 = vsub.f32 %v1197_v57, %v1299_v13 }
 0x44a   : > { %v1312_v15 = vmul.f32 1.442695, %v1307_v14 }
 0x44b   : > { %v1302_v16 = vpop.xlane.xlu0 %1301 }
 0x44c   : > { %2664 = vpow2.f32 %v1312_v15  ;;  %v1308_v18 = vsub.f32 %v1243_v63, %v1302_v16  ;;  %v1537_v63 = vsel %vm1345_vm5, %v1528_v62, 0 }
 0x44e   : > { %v1314_v20 = vmul.f32 1.442695, %v1308_v18 }
 0x44f   : > { %v1305_v21 = vpop.xlane.xlu1 %1304  ;;  %v1039_v22 = vpop.permute.xlu0 %1038 }
 0x450   : > { %2666 = vpow2.f32 %v1314_v20  ;;  %v1309_v23 = vsub.f32 %v1289_v5, %v1305_v21  ;;  %1041 = vst.msk [vmem:[#allocation5] sm:$0xf] %vm1028_vm3, %v1039_v22 }
 0x452   : > { %v2663_v24 = vpop.eup %2662  ;;  %v1316_v25 = vmul.f32 1.442695, %v1309_v23 }
 0x453   : > { %v1056_v26 = vpop.permute.xlu1 %1055  ;;  %v1318_v28 = vsel %vm1109_vm4, %v2663_v24, 0.0 }
 0x454   : > { %2668 = vpow2.f32 %v1316_v25  ;;  %1059 = vst.msk [vmem:[#allocation5 + $0x4] sm:$0xf] %vm1028_vm3, %v1056_v26  ;;  %1319 = vadd.xlane.f32.xlu0 %v1318_v28 }
 0x456   : > { %v2665_v29 = vpop.eup %2664 }
 0x457   : > { %v1321_v30 = vsel %vm1109_vm4, %v2665_v29, 0.0  ;;  %v1098_v31 = vld [vmem:[#allocation5] sm:$0xf] }
 0x458   : > { %1322 = vadd.xlane.f32.xlu1 %v1321_v30  ;;  %v1347_v32 = vsel %vm1345_vm5, %v1098_v31, 0 }
 0x459   : > { %2483 = vmatpush3.bf16.msra.mxu1 %v1347_v32 }
 0x45a   : > { %v2667_v33 = vpop.eup %2666  ;;  %2494 = vmatprep.subr.bf16.mxu1 %v2790_v17 }
 0x45b   : > { %v1324_v34 = vsel %vm1109_vm4, %v2667_v33, 0.0  ;;  %v1099_v35 = vld [vmem:[#allocation5 + $0x4] sm:$0xf] }
 0x45c   : > { %1325 = vadd.xlane.f32.xlu0 %v1324_v34  ;;  %v1393_v36 = vsel %vm1345_vm5, %v1099_v35, 0 }
 0x45d   : > { %2489 = vmatpush3.bf16.msra.mxu0 %v1393_v36 }
 0x45e   : > { %v2669_v37 = vpop.eup %2668  ;;  %2500 = vmatprep.subr.bf16.mxu0 %v2790_v17 }
 0x45f   : > { %v1327_v38 = vsel %vm1109_vm4, %v2669_v37, 0.0 }
 0x460   : > { %1328 = vadd.xlane.f32.xlu1 %v1327_v38 }
 0x471   : > { %1070 = vrot.lane.b32.xlu1 %v3105_v27, %s2801_s27 }
 0x472   : > { %1085 = vrot.lane.b32.xlu0 %v3105_v27, %s2802_s19 }
 0x4e1   : > { %v1320_v39 = vpop.xlane.xlu0 %1319 }
 0x4e2   : > { %2670 = vrcp.f32 %v1320_v39 }
 0x4e5   : > { %v1323_v40 = vpop.xlane.xlu1 %1322 }
 0x4e6   : > { %2672 = vrcp.f32 %v1323_v40 }
 0x4e9   : > { %v1326_v41 = vpop.xlane.xlu0 %1325 }
 0x4ea   : > { %2674 = vrcp.f32 %v1326_v41 }
 0x4ec   : > { %v2671_v42 = vpop.eup %2670 }
 0x4ed   : > { %v1334_v43 = vmul.f32 %v2671_v42, %v2663_v24  ;;  %v1329_v44 = vpop.xlane.xlu1 %1328  ;;  %v1086_v45 = vpop.permute.xlu0 %1085 }
 0x4ee   : > { %2676 = vrcp.f32 %v1329_v44  ;;  %1089 = vst.msk [vmem:[#allocation5 + $0xc] sm:$0xf] %vm1028_vm3, %v1086_v45  ;;  %v2378_v44 = vld [vmem:[%s3435_s24] ss:$0 sm:$0xff]  ;;  %s3442_s24 = sld [smem:[#allocation11_spill]] }
 0x4ef   : > { %v1338_v46 = vpack.c.bf16 %v1334_v43, %v1334_v43 }
 0x4f0   : > { %v2673_v47 = vpop.eup %2672 }
 0x4f1   : > { %v1335_v48 = vmul.f32 %v2673_v47, %v2665_v29  ;;  %v1071_v49 = vpop.permute.xlu1 %1070  ;;  %2485 = vmatmul.mubr.msk.bf16.vlgmr.msra.gmra.mrb[12].mxu1 %vm1109_vm4, %v1338_v46 }
 0x4f2   : > { %1074 = vst.msk [vmem:[#allocation5 + $0x8] sm:$0xf] %vm1028_vm3, %v1071_v49  ;;  %2496 = vmatprep.mubr.msk.bf16.mxu1 %vm2791_vm1, %v2790_v17 }
 0x4f3   : > { %v1339_v27 = vpack.c.bf16 %v1335_v48, %v1335_v48 }
 0x4f4   : > { %v2675_v50 = vpop.eup %2674  ;;  %p2393_p1 = scmp.ne.s32.totalorder %s3442_s24, 1 }
 0x4f5   : > { %2491 = vmatmul.mubr.msk.bf16.vlgmr.msra.gmra.mrb[8].mxu0 %vm1109_vm4, %v1339_v27  ;;  %v1101_v51 = vld [vmem:[#allocation5 + $0xc] sm:$0xf]  ;;  %v1336_v54 = vmul.f32 %v2675_v50, %v2667_v33  ;;  %vm2804_vm7 = vmmov (!%p2393_p1), 0   ;;  %s3444_s20 = sld [smem:[#allocation35_spill]] (!%p2393_p1)  ;;  %s3445_s21 = sld [smem:[#allocation34_spill]] (!%p2393_p1)  ;;  %vm2078_vm8 = vcmask (!%p2393_p1), 16384  }
 0x4f6   : > { %v1485_v52 = vsel %vm1345_vm5, %v1101_v51, 0  ;;  %2502 = vmatprep.mubr.msk.bf16.mxu0 %vm2791_vm1, %v2790_v17  ;;  %s3446_s26 = sld [smem:[#allocation36_spill]] (!%p2393_p1)  ;;  %s3447_s19 = sld [smem:[#allocation23_spill]] (!%p2393_p1)  ;;  %vm2098_vm9 = vcmask (!%p2393_p1), 0  }
 0x4f7   : > { %2501 = vmatpush3.bf16.msra.mxu0 %v1485_v52  ;;  %v1340_v59 = vpack.c.bf16 %v1336_v54, %v1336_v54  ;;  %v2656_v54 = vld [vmem:[%s3041_s5] sm:$0xff]  }
 0x4f8   : > { %v2677_v53 = vpop.eup %2676  ;;  %2512 = vmatprep.subr.bf16.mxu0 %v2790_v17 }
 0x4f9   : > { %v1337_v55 = vmul.f32 %v2677_v53, %v2669_v37  ;;  %v1100_v56 = vld [vmem:[#allocation5 + $0x8] sm:$0xf] }
 0x4fa   : > { %v1439_v57 = vsel %vm1345_vm5, %v1100_v56, 0 }
 0x4fb   : > { %2495 = vmatpush3.bf16.msra.mxu1 %v1439_v57  ;;  %v1341_v58 = vpack.c.bf16 %v1337_v55, %v1337_v55  ;;  %v2657_v55 = vld [vmem:[%s3041_s5 + $0x8] sm:$0xff]  }
 0x4fc   : > { %2506 = vmatprep.subr.bf16.mxu1 %v2790_v17  ;;  %s3448_s3 = scalar_lea.vmem (!%p2393_p1), %s3447_s19, %s2994_s0 }
 0x4fd   : > { %2503 = vmatmul.mubr.msk.bf16.vlgmr.msra.gmra.mrb[12].mxu0 %vm1109_vm4, %v1341_v58 }
 0x4fe   : > { %2497 = vmatmul.mubr.msk.bf16.vlgmr.msra.gmra.mrb[16].mxu1 %vm1109_vm4, %v1340_v59  ;;  %2514 = vmatprep.mubr.msk.bf16.mxu0 %vm2791_vm1, %v2790_v17  ;;  %v2379_v59 = vld [vmem:[%s3436_s7] ss:$0 sm:$0xff]  ;;  %s3443_s7 = sld [smem:[#allocation33_spill]] (!%p2393_p1) }
 0x4ff   : > { %2508 = vmatprep.mubr.msk.bf16.mxu1 %vm2791_vm1, %v2790_v17  ;;  %2513 = vmatpush3.bf16.msra.mxu0 %v1583_v61  ;;  %v2380_v61 = vld [vmem:[%s3438_s1] ss:$0 sm:$0xff] }
 0x500   : > { %2524 = vmatprep.subr.bf16.mxu0 %v2790_v17  ;;  %2507 = vmatpush3.bf16.msra.mxu1 %v1537_v63 }
 0x501   : > { %2518 = vmatprep.subr.bf16.mxu1 %v2790_v17 }
 0x5c4   : > { %v1383_v1 = vpop.f32.mrb[12].mxu1 }
 0x5c5   : > { %v1531_v2 = vpack.c.bf16 %v1383_v1, %v1383_v1  ;;  %v2486_v3 = vpop.f32.mrb[13].mxu1  ;;  %v2658_v1 = vld [vmem:[%s3051_s4] sm:$0xff]  }
 0x5c6   : > { %v1386_v5 = vpop.f32.mrb[14].mxu1  ;;  %v2660_v3 = vld [vmem:[%s3051_s4 + $0x10] sm:$0xff]  }
 0x5c7   : > { %v2487_v7 = vpop.f32.mrb[15].mxu1  ;;  %2515 = vmatmul.mubr.msk.bf16.vlgmr.msra.gmra.mrb[16].mxu0 %vm1109_vm4, %v1531_v2  ;;  %v2659_v2 = vld [vmem:[%s3051_s4 + $0x8] sm:$0xff]   ;;  %v2381_v5 = vld [vmem:[%s3440_s25] ss:$0 sm:$0xff] }
 0x5c8   : > { %v1429_v8 = vpop.f32.mrb[8].mxu0  ;;  %2525 = vmatpush3.bf16.msra.mxu0 %v1678_v4  ;;  %2526 = vmatprep.mubr.msk.bf16.mxu0 %vm2791_vm1, %v2790_v17  ;;  %v2661_v4 = vld [vmem:[%s3051_s4 + $0x18] sm:$0xff]  }
 0x5c9   : > { %v1532_v9 = vpack.c.bf16 %v1429_v8, %v1429_v8  ;;  %v2492_v10 = vpop.f32.mrb[9].mxu0  ;;  %2538 = vmatprep.subr.bf16.mxu0 %v2790_v17 }
 0x5ca   : > { %v1432_v12 = vpop.f32.mrb[10].mxu0 }
 0x5cb   : > { %v2493_v13 = vpop.f32.mrb[11].mxu0  ;;  %2509 = vmatmul.mubr.msk.bf16.vlgmr.msra.gmra.mrb[20].mxu1 %vm1109_vm4, %v1532_v9 }
 0x5cc   : > { %2519 = vmatpush3.bf16.msra.mxu1 %v1630_v11  ;;  %2520 = vmatprep.mubr.msk.bf16.mxu1 %vm2791_vm1, %v2790_v17 }
 0x5cd   : > { %2530 = vmatprep.subr.bf16.mxu1 %v2790_v17 }
 0x5d0   : > { %v1521_v14 = vpop.f32.mrb[12].mxu0 }
 0x5d1   : > { %v1673_v15 = vpack.c.bf16 %v1521_v14, %v1521_v14  ;;  %v1475_v16 = vpop.f32.mrb[16].mxu1  ;;  %v2504_v18 = vpop.f32.mrb[13].mxu0 }
 0x5d2   : > { %v1625_v20 = vpack.c.bf16 %v1475_v16, %v1475_v16  ;;  %v2498_v21 = vpop.f32.mrb[17].mxu1  ;;  %v1524_v22 = vpop.f32.mrb[14].mxu0 }
 0x5d3   : > { %v1478_v23 = vpop.f32.mrb[18].mxu1  ;;  %v2505_v24 = vpop.f32.mrb[15].mxu0  ;;  %2527 = vmatmul.mubr.msk.bf16.vlgmr.msra.gmra.mrb[20].mxu0 %vm1109_vm4, %v1673_v15  ;;  %v2385_v22 = vld [vmem:[%s909_s17] ss:$0 sm:$0xff] }
 0x5d4   : > { %v2499_v25 = vpop.f32.mrb[19].mxu1  ;;  %2521 = vmatmul.mubr.msk.bf16.vlgmr.msra.gmra.mrb[24].mxu1 %vm1109_vm4, %v1625_v20  ;;  %2546 = vmatprep.mubr.msk.bf16.mxu0 %vm2791_vm1, %v2790_v17 }
 0x5d5   : > { %2534 = vmatprep.mubr.msk.bf16.mxu1 %vm2791_vm1, %v2790_v17  ;;  %2531 = vmatpush3.bf16.msra.mxu1 %v2656_v54 }
 0x5d6   : > { %2532 = vmatprep.subr.bf16.mxu1 %v2790_v17  ;;  %2539 = vmatpush3.bf16.msra.mxu0 %v2658_v1 }
 0x5d7   : > { %2540 = vmatprep.subr.bf16.mxu0 %v2790_v17 }
 0x5d9   : > { %2533 = vmatpush3.bf16.msra.mxu1 %v2657_v55 }
 0x5da   : > { %2541 = vmatpush3.bf16.msra.mxu0 %v2659_v2 }
 0x5db   : > { %2542 = vmatprep.subr.bf16.mxu0 %v2790_v17 }
 0x5de   : > { %2543 = vmatpush3.bf16.msra.mxu0 %v2660_v3 }
 0x5df   : > { %2544 = vmatprep.subr.bf16.mxu0 %v2790_v17 }
 0x5e2   : > { %2545 = vmatpush3.bf16.msra.mxu0 %v2661_v4 }
 0x69a   : > { %v1619_v26 = vpop.f32.mrb[16].mxu0 }
 0x69b   : > { %v2516_v28 = vpop.f32.mrb[17].mxu0 }
 0x69c   : > { %v1622_v29 = vpop.f32.mrb[18].mxu0 }
 0x69d   : > { %v2517_v30 = vpop.f32.mrb[19].mxu0 }
 0x69e   : > { %v1573_v31 = vpop.f32.mrb[20].mxu1 }
 0x69f   : > { %v1620_v32 = vadd.f32 %v1619_v26, %v1573_v31  ;;  %v2510_v33 = vpop.f32.mrb[21].mxu1 }
 0x6a0   : > { %v1576_v34 = vpop.f32.mrb[22].mxu1 }
 0x6a1   : > { %v2511_v35 = vpop.f32.mrb[23].mxu1 }
 0x6a6   : > { %v1714_v36 = vpop.f32.mrb[20].mxu0 }
 0x6a7   : > { %v1666_v37 = vpop.f32.mrb[24].mxu1  ;;  %v2528_v38 = vpop.f32.mrb[21].mxu0 }
 0x6a8   : > { %v1672_v39 = vadd.f32 %v1666_v37, %v1620_v32  ;;  %v2522_v40 = vpop.f32.mrb[25].mxu1  ;;  %v1717_v41 = vpop.f32.mrb[22].mxu0 }
 0x6a9   : > { %v1669_v42 = vpop.f32.mrb[26].mxu1  ;;  %v2529_v43 = vpop.f32.mrb[23].mxu0  ;;  %v2391_v40 = vld [vmem:[%s912_s16] ss:$0 sm:$0xff] }
 0x6aa   : > { %v1720_v45 = vadd.f32 %v1714_v36, %v1672_v39  ;;  %v2523_v46 = vpop.f32.mrb[27].mxu1  ;;  %v2392_v42 = vld [vmem:[%s915_s11] ss:$0 sm:$0xff] }
 0x6ab   : > { %v2803_v46 = vmov (!%p2393_p1), 0.0  }
 0x6ac   : > { %v1728_v47 = vadd.f32 %v2378_v44, %v1720_v45  ;;  %v2684_v45 = vld [vmem:[%s3443_s7] sm:$0xff] (!%p2393_p1)   ;;  %2550 = vmatprep.subr.bf16.mxu0 (!%p2393_p1), %v2803_v46  ;;  %2558 = vmatprep.subr.bf16.mxu1 (!%p2393_p1), %v2803_v46 }
 0x6ae   : > { %v1729_v48 = vadd.f32 %v1728_v47, %v3089_v19  ;;  %v2685_v47 = vld [vmem:[%s3443_s7 + $0x8] sm:$0xff] (!%p2393_p1)  }
 0x6b0   : > { %v1732_v49 = vsel %vm982_vm2, %v1729_v48, 0.0 }
 0x6b1   : > { %1733 = vadd.xlane.f32.xlu1 %v1732_v49  ;;  %v2686_v49 = vld [vmem:[%s3444_s20] sm:$0xff] (!%p2393_p1)  }
 0x73e   : > { %v1734_v27 = vpop.xlane.xlu1 %1733 }
 0x73f   : > { %v1736_v50 = vmul.f32 0.03125, %v1734_v27  ;;  %v2687_v27 = vld [vmem:[%s3444_s20 + $0x8] sm:$0xff] (!%p2393_p1)  }
 0x741   : > { %v1737_v51 = vsub.f32 %v1729_v48, %v1736_v50  ;;  %v1960_v50 = vld [vmem:[%s3445_s21] sm:$0x1] (!%p2393_p1) }
 0x743   : > { %v1738_v52 = vmul.f32 %v1737_v51, %v1737_v51 }
 0x745   : > { %v1739_v53 = vsel %vm982_vm2, %v1738_v52, 0.0 }
 0x746   : > { %1740 = vadd.xlane.f32.xlu0 %v1739_v53 }
 0x7d3   : > { %v1741_v19 = vpop.xlane.xlu0 %1740 }
 0x7d4   : > { %v1742_v56 = vmul.f32 0.03125, %v1741_v19 }
 0x7d6   : > { %v1743_v57 = vadd.f32 1e-05, %v1742_v56 }
 0x7d8   : > { %2678 = vrsqrt.f32 %v1743_v57  ;;  %v2022_v57 = vld [vmem:[%s3446_s26] sm:$0x1] (!%p2393_p1) }
 0x7e2   : > { %v2679_v58 = vpop.eup %2678 }
 0x7e3   : > { %v1745_v60 = vmul.f32 %v2679_v58, %v1737_v51 }
 0x7e5   : > { %v1752_v62 = vmul.f32 %v2379_v59, %v1745_v60  ;;  %v2092_v59 = vld [vmem:[%s3448_s3] sm:$0x1] (!%p2393_p1) }
 0x7e7   : > { %v1759_v63 = vadd.f32 %v2380_v61, %v1752_v62 }
 0x7e9   : > { %v1760_v0 = vpack.c.bf16 %v1759_v63, %v1759_v63 }
 0x7eb   : > { %2535 = vmatmul.mubr.msk.bf16.vlgmr.msra.gmra.mrb[28].mxu1 %vm982_vm2, %v1760_v0 }
 0x7ec   : > { %2562 = vmatprep.mubr.msk.bf16.mxu1 (!%p2393_p1), %vm2804_vm7, %v2803_v46  ;;  %2559 = vmatpush3.bf16.msra.mxu1 (!%p2393_p1), %v2686_v49 }
 0x7ed   : > { %2560 = vmatprep.subr.bf16.mxu1 (!%p2393_p1), %v2803_v46 }
 0x7f0   : > { %2561 = vmatpush3.bf16.msra.mxu1 (!%p2393_p1), %v2687_v27 }
 0x8be   : > { %v1821_v6 = vpop.f32.mrb[28].mxu1 }
 0x8bf   : > { %v1822_v7 = vadd.f32 %v2381_v5, %v1821_v6  ;;  %v2536_v8 = vpop.f32.mrb[29].mxu1 }
 0x8c0   : > { %v1824_v9 = vpop.f32.mrb[30].mxu1 }
 0x8c1   : > { %v1827_v10 = vmul.f32 %v1822_v7, %v1822_v7  ;;  %v2537_v11 = vpop.f32.mrb[31].mxu1 }
 0x8c3   : > { %v1828_v12 = vmul.f32 %v1827_v10, %v1822_v7 }
 0x8c5   : > { %v1829_v13 = vmul.f32 0.044715, %v1828_v12 }
 0x8c7   : > { %v1830_v14 = vadd.f32 %v1829_v13, %v1822_v7 }
 0x8c9   : > { %v1831_v15 = vmul.f32 0.7978846, %v1830_v14 }
 0x8cb   : > { %2680 = vtanh.f32 %v1831_v15 }
 0x8d5   : > { %v2681_v17 = vpop.eup %2680 }
 0x8d6   : > { %v1833_v16 = vadd.f32 1.0, %v2681_v17 }
 0x8d8   : > { %v1834_v18 = vmul.f32 0.5, %v1833_v16 }
 0x8da   : > { %v1835_v20 = vmul.f32 %v1834_v18, %v1822_v7 }
 0x8dc   : > { %v1836_v21 = vpack.c.bf16 %v1835_v20, %v1835_v20 }
 0x8de   : > { %2547 = vmatmul.mubr.msk.bf16.vlgmr.msra.gmra.mrb[24].mxu0 %vm1876_vm6, %v1836_v21 }
 0x8df   : > { %2551 = vmatpush3.bf16.msra.mxu0 (!%p2393_p1), %v2684_v45  ;;  %2554 = vmatprep.mubr.msk.bf16.mxu0 (!%p2393_p1), %vm2804_vm7, %v2803_v46 }
 0x8e0   : > { %2552 = vmatprep.subr.bf16.mxu0 (!%p2393_p1), %v2803_v46 }
 0x8e3   : > { %2553 = vmatpush3.bf16.msra.mxu0 (!%p2393_p1), %v2685_v47 }
 0x9b1   : > { %v1914_v23 = vpop.f32.mrb[24].mxu0 }
 0x9b2   : > { %v1915_v24 = vadd.f32 %v2385_v22, %v1914_v23  ;;  %v2548_v25 = vpop.f32.mrb[25].mxu0 }
 0x9b3   : > { %v1917_v26 = vpop.f32.mrb[26].mxu0 }
 0x9b4   : > { %v2549_v28 = vpop.f32.mrb[27].mxu0  ;;  %v1920_v29 = vadd.f32 %v1915_v24, %v1759_v63 }
 0x9b6   : > { %v1923_v30 = vsel %vm982_vm2, %v1920_v29, 0.0 }
 0x9b7   : > { %1924 = vadd.xlane.f32.xlu0 %v1923_v30 }
 0xa44   : > { %v1925_v31 = vpop.xlane.xlu0 %1924 }
 0xa45   : > { %v1926_v32 = vmul.f32 0.03125, %v1925_v31 }
 0xa47   : > { %v1927_v33 = vsub.f32 %v1920_v29, %v1926_v32 }
 0xa49   : > { %v1928_v34 = vmul.f32 %v1927_v33, %v1927_v33 }
 0xa4b   : > { %v1929_v35 = vsel %vm982_vm2, %v1928_v34, 0.0 }
 0xa4c   : > { %1930 = vadd.xlane.f32.xlu1 %v1929_v35 }
 0xad9   : > { %v1931_v36 = vpop.xlane.xlu1 %1930 }
 0xada   : > { %v1932_v37 = vmul.f32 0.03125, %v1931_v36 }
 0xadc   : > { %v1933_v38 = vadd.f32 1e-05, %v1932_v37 }
 0xade   : > { %2682 = vrsqrt.f32 %v1933_v38 }
 0xae8   : > { %v2683_v39 = vpop.eup %2682 }
 0xae9   : > { %v1935_v41 = vmul.f32 %v2683_v39, %v1927_v33  ;;  %1954 = sbr.rel (%p2393_p1) target bundleno = 3561 (0xde9), region = 112 }
 0xaeb   : > { %v1942_v43 = vmul.f32 %v2391_v40, %v1935_v41 }
 0xaed   : > { %v1949_v44 = vadd.f32 %v2392_v42, %v1942_v43 }
 0xaef   : > { %1950 = vst.msk [vmem:[#allocation2] sm:$0xff] %vm982_vm2, %v1949_v44  ;;  %v1955_v48 = vpack.c.bf16 (!%p2393_p1), %v1949_v44, %v1949_v44 }
 0xaf1   : > { %2555 = vmatmul.mubr.msk.bf16.vlgmr.msra.gmra.mrb[0].mxu0 %vm982_vm2, %v1955_v48 }
 0xbc4   : > { %v2010_v51 = vpop.f32.mrb[0].mxu0 }
 0xbc5   : > { %v2011_v52 = vadd.f32 %v2010_v51, %v1960_v50  ;;  %v2556_v53 = vpop.f32.mrb[1].mxu0 }
 0xbc6   : > { %v2013_v54 = vpop.f32.mrb[2].mxu0 }
 0xbc7   : > { %2688 = vtanh.f32 %v2011_v52  ;;  %v2557_v55 = vpop.f32.mrb[3].mxu0 }
 0xbd1   : > { %v2689_v19 = vpop.eup %2688 }
 0xbd2   : > { %v2017_v56 = vpack.c.bf16 %v2689_v19, %v2689_v19 }
 0xbd4   : > { %2563 = vmatmul.mubr.msk.bf16.vlgmr.msra.gmra.mrb[0].mxu1 %vm982_vm2, %v2017_v56 }
 0xca7   : > { %v2072_v58 = vpop.f32.mrb[0].mxu1 }
 0xca8   : > { %v2073_v60 = vadd.f32 %v2072_v58, %v2022_v57  ;;  %v2564_v61 = vpop.f32.mrb[1].mxu1 }
 0xca9   : > { %v2075_v62 = vpop.f32.mrb[2].mxu1 }
 0xcaa   : > { %v2565_v63 = vpop.f32.mrb[3].mxu1  ;;  %v2080_v0 = vsel %vm2078_vm8, %v2073_v60, -inf  ;;  %2079 = vst.msk [vmem:[%s3071_s6] sm:$0x1] %vm2078_vm8, %v2073_v60  ;;  %v2093_v1 = vmul.f32 %v2092_v59, %v2073_v60 }
 0xcab   : > { %2081 = vmax.xlane.f32.xlu0 %v2080_v0 }
 0xcac   : > { %v2094_v2 = vsel %vm2078_vm8, %v2093_v1, 0.0 }
 0xcad   : > { %2095 = vadd.xlane.f32.xlu1 %v2094_v2 }
 0xd38   : > { %v2082_v3 = vpop.xlane.xlu0 %2081 }
 0xd39   : > { %v2083_v4 = vsub.f32 %v2073_v60, %v2082_v3 }
 0xd3a   : > { %v2096_v12 = vpop.xlane.xlu1 %2095 }
 0xd3b   : > { %v2084_v5 = vmul.f32 1.442695, %v2083_v4 }
 0xd3d   : > { %2690 = vpow2.f32 %v2084_v5 }
 0xd47   : > { %v2691_v6 = vpop.eup %2690 }
 0xd48   : > { %v2086_v7 = vsel %vm2078_vm8, %v2691_v6, 0.0 }
 0xd49   : > { %2087 = vadd.xlane.f32.xlu0 %v2086_v7 }
 0xdd6   : > { %v2088_v8 = vpop.xlane.xlu0 %2087 }
 0xdd7   : > { %2692 = vlog2.f32 %v2088_v8 }
 0xde1   : > { %v2693_v9 = vpop.eup %2692 }
 0xde2   : > { %v2090_v10 = vmul.f32 0.6931472, %v2693_v9 }
 0xde4   : > { %v2091_v11 = vadd.f32 %v2090_v10, %v2082_v3 }
 0xde6   : > { %v2097_v13 = vsub.f32 %v2091_v11, %v2096_v12 }
 0xde8   : > { %2099 = vst.msk [vmem:[%s918_s12] sm:$0x1] %vm2098_vm9, %v2097_v13 }
 0xde9 PF: > { %s3450_s29 = sld [smem:[#allocation12_spill]]  ;;  %s3452_s22 = sld [smem:[#allocation37_spill]] }
 0xdea   : > { %s2116_s5 = sshll.u32 %s3071_s6, 4  ;;  %s3453_s30 = sand.u32 1, %s2764_s28   ;;  %s2117_s5 = int_to_ptr.vmem [resolvable:$true] %s2116_s5 }
 0xdeb   : > { %s2101_s21 = scalar_lea.sflag [#allocation7], %s3453_s30  ;;  %s2694_s25 = scalar_lea.vmem %s2117_s5, 16 }
 0xdec   : > { %p2695_p2 = scmp.ne.s32.totalorder %s2117_s5, %s2694_s25  ;;  %s2805_s12 = smov [#allocation6]  }
 0xded   : > { %s2698_s0 = sshll.u32 %s2805_s12, 4  ;;  %s2699_s0 = int_to_ptr.vmem [resolvable:$false] %s2698_s0 }
 0xdee   : > { %p2696_p4 = pnand %p2695_p2, %p2970_p3  ;;  %s2700_s4 = scalar_lea.vmem %s2699_s0, 32 }
 0xdef   : > { %s2400_s10 = sshll.u32 %s3450_s29, 4  ;;  %p2701_p6 = scmp.lt.s32.totalorder %s2117_s5, %s2699_s0 }
 0xdf0   : > { %s3296_s1 = scalar_lea.hbm %s3452_s22, %s2400_s10  ;;  %p2697_p5 = pneg %p2696_p4 }
 0xdf1   : > { %p2702_p7 = scmp.lt.s32.totalorder %s2700_s4, %s2694_s25 }
 0xdf3   : > { %p2703_p8 = por %p2702_p7, %p2701_p6 }
 0xdf5   : > { %p2704_p10 = pnand %p2703_p8, %p2697_p5 }
 0xdf7   : > { %2707 = shalt.err (!%p2704_p10)
}
 0xdf8   : > { %s2708_s6 = scalar_lea.hbm %s3296_s1, 16  ;;  %s2712_s27 = scalar_lea.hbm %s3452_s22, 32 }
 0xdf9   : > { %p2709_p11 = scmp.ne.s32.totalorder %s3296_s1, %s2708_s6  ;;  %p2713_p0 = scmp.lt.u32.totalorder %s3296_s1, %s3452_s22 }
 0xdfa   : > { %p2714_p1 = scmp.lt.u32.totalorder %s2712_s27, %s2708_s6  ;;  %p2716_p4 = scmp.lt.u32.totalorder %s2708_s6, %s3296_s1 }
 0xdfb   : > { %p2710_p12 = pnand %p2709_p11, %p2970_p3 }
 0xdfc   : > { %p2715_p2 = por %p2714_p1, %p2713_p0 }
 0xdfd   : > { %p2711_p13 = pneg %p2710_p12 }
 0xdfe   : > { %p2717_p5 = por %p2716_p4, %p2715_p2 }
 0xe00   : > { %p2718_p6 = pnand %p2717_p5, %p2711_p13 }
 0xe02   : > { %2721 = shalt.err (!%p2718_p6)
}
 0xe03   : > { %2566 = dma.vmem_to_hbm [thread:$0]  (%p2970_p3), %s2117_s5, 16, %s3296_s1, %s2101_s21  }
 0xe04 PF: > { %s3454_s18 = sld [smem:[#allocation15_spill]]  ;;  %s3455_s24 = sld [smem:[#allocation9_spill]] }
 0xe0a   : > { %p2572_p7 = scmp.ge.s32.totalorder %s3454_s18, 2  ;;  %s2131_s29 = sand.u32 1, %s3455_s24  }
 0xe0b   : > { %s2132_s10 = scalar_lea.sflag [#allocation7], %s2131_s29 }
 0xe0c   : > { %p2569_p8 = pnand %p2572_p7, %p2980_p9 }
 0xe0e   : > { %2755 = dma.done.wait (!%p2569_p8), %s2132_s10, 16  }
 0xe0f   : > { %2757 = vsyncadd (!%p2569_p8), %s2132_s10, 4294967280  ;;  %s36_s1 = sadd.s32 1, %s3454_s18   ;;  %s3457_s11 = sld [smem:[#allocation10_spill]] }
 0xe10   : > { %p33_p10 = scmp.ge.s32.totalorder %s36_s1, 6   ;;  %s3458_s29 = sld [smem:[#allocation20_spill]] }
 0xe11   : > { %s3459_s30 = sld [smem:[#allocation13_spill]]  ;;  %s3460_s4 = sld [smem:[#allocation14_spill]] }
 0xe12   : > { %s3461_s0 = sld [smem:[#allocation16_spill]]  ;;  %s3462_s23 = sld [smem:[#allocation18_spill]] }
 0xe13   : > { %s3463_s3 = smov %s2764_s28  ;;  %35 = sbr.rel (!%p33_p10) target bundleno = 24 (0x18), region = 210 }
 0xe15   : > { %s3464_s28 = smov %s3457_s11 }
 0xe1a   :  { %2142 = vsyncpa [#allocation7], 1 }
 0xe1b   :  { %2144 = vsyncpa [#allocation7 + $0x1], 1 }

</bundles_post_ra>
